<compile_context>
chip_gen: v7x
topology: tpu7x:2x2x1
jax: 0.10.0
libtpu: 0.0.40
codegen_flags: <defaults>
</compile_context>

<pallas_src>
import functools

import jax
import jax.numpy as jnp
from jax.experimental import pallas as pl
from jax.experimental.pallas import tpu as pltpu

F32 = jnp.float32
VMEM_LIMIT = 32 * 1024 * 1024  # fits scoped VMEM on v5e/v6e and v7x's 64 MiB physical


# ------------------------------- tiling utils -------------------------------- #

def _round_up(x, m):
    return (x + m - 1) // m * m


def _row_tile(m, max_bm=256):
    """Row tile (multiple of 8, capped at 256) and the padded row count."""
    bm = min(max_bm, _round_up(m, 8))
    return bm, _round_up(m, bm)


def _pick_tile(n, prefer):
    for t in prefer:
        if n % t == 0:
            return t
    return n  # full extent (allowed even when not a multiple of 8/128)


# ------------------------- matmul (+bias, +ReLU) kernel ----------------------- #

def _mm_bias_kernel(x_ref, w_ref, b_ref, o_ref, acc_ref, *, relu):
    @pl.when(pl.program_id(2) == 0)
    def _():
        acc_ref[...] = jnp.zeros_like(acc_ref)

    acc_ref[...] += jnp.dot(x_ref[...], w_ref[...], preferred_element_type=jnp.float32)

    @pl.when(pl.program_id(2) == pl.num_programs(2) - 1)
    def _():
        y = acc_ref[...] + b_ref[...]
        if relu:
            y = jnp.maximum(y, 0.0)
        o_ref[...] = y.astype(o_ref.dtype)


def matmul_bias(x, w, b, relu=False):
    """x: [M, K], w: [K, N], b: [N] -> [M, N] (optionally fused ReLU)."""
    M, K = x.shape
    N = w.shape[1]
    bm, m_pad = _row_tile(M)
    bn = _pick_tile(N, (256, 128))
    bk = _pick_tile(K, (512, 256, 128))
    if m_pad != M:
        x = jnp.pad(x, ((0, m_pad - M), (0, 0)))
    out = pl.pallas_call(
        functools.partial(_mm_bias_kernel, relu=relu),
        out_shape=jax.ShapeDtypeStruct((m_pad, N), F32),
        grid=(m_pad // bm, N // bn, K // bk),
        in_specs=[
            pl.BlockSpec((bm, bk), lambda i, j, kk: (i, kk)),
            pl.BlockSpec((bk, bn), lambda i, j, kk: (kk, j)),
            pl.BlockSpec((1, bn), lambda i, j, kk: (0, j)),
        ],
        out_specs=pl.BlockSpec((bm, bn), lambda i, j, kk: (i, j)),
        scratch_shapes=[pltpu.VMEM((bm, bn), jnp.float32)],
        compiler_params=pltpu.CompilerParams(
            dimension_semantics=("parallel", "parallel", "arbitrary"),
            vmem_limit_bytes=VMEM_LIMIT),
    )(x, w, b.reshape(1, N))
    return out[:M] if m_pad != M else out


# --------------- matmul + bias + residual + LayerNorm (fused) ----------------- #

def _mm_res_ln_kernel(x_ref, w_ref, b_ref, res_ref, g_ref, be_ref, o_ref):
    y = jnp.dot(x_ref[...], w_ref[...], preferred_element_type=jnp.float32)
    y = y + b_ref[...] + res_ref[...]
    mean = jnp.mean(y, axis=-1, keepdims=True)
    var = jnp.mean((y - mean) ** 2, axis=-1, keepdims=True)
    o_ref[...] = ((y - mean) * jax.lax.rsqrt(var + 1e-5) * g_ref[...]
                  + be_ref[...]).astype(o_ref.dtype)


def matmul_bias_res_ln(x, w, b, res, g, beta):
    """LayerNorm((x @ w + b) + res) with gamma/beta. x: [M,K], res: [M,N]."""
    M, K = x.shape
    N = w.shape[1]
    bm, m_pad = _row_tile(M)
    if m_pad != M:
        x = jnp.pad(x, ((0, m_pad - M), (0, 0)))
        res = jnp.pad(res, ((0, m_pad - M), (0, 0)))
    out = pl.pallas_call(
        _mm_res_ln_kernel,
        out_shape=jax.ShapeDtypeStruct((m_pad, N), F32),
        grid=(m_pad // bm,),
        in_specs=[
            pl.BlockSpec((bm, K), lambda i: (i, 0)),
            pl.BlockSpec((K, N), lambda i: (0, 0)),
            pl.BlockSpec((1, N), lambda i: (0, 0)),
            pl.BlockSpec((bm, N), lambda i: (i, 0)),
            pl.BlockSpec((1, N), lambda i: (0, 0)),
            pl.BlockSpec((1, N), lambda i: (0, 0)),
        ],
        out_specs=pl.BlockSpec((bm, N), lambda i: (i, 0)),
        compiler_params=pltpu.CompilerParams(
            dimension_semantics=("parallel",), vmem_limit_bytes=VMEM_LIMIT),
    )(x, w, b.reshape(1, N), res, g.reshape(1, N), beta.reshape(1, N))
    return out[:M] if m_pad != M else out


# ------------- conv1d (k taps in-kernel) + ReLU + instance-norm --------------- #

def _conv_block_kernel(xp_ref, w_ref, b_ref, o_ref, *, k, t_out, relu, num_inorm):
    xp = xp_ref[0]                                         # (Tp, Cin)
    cout = o_ref.shape[-1]
    acc = jnp.zeros((t_out, cout), jnp.float32)
    for j in range(k):                                     # static, fully unrolled taps
        acc = acc + jnp.dot(xp[j:j + t_out, :], w_ref[j],
                            preferred_element_type=jnp.float32)
    y = acc + b_ref[...]
    if relu:
        y = jnp.maximum(y, 0.0)
    for _ in range(num_inorm):                             # (ReLU -> IN over time) x n
        y = jnp.maximum(y, 0.0)
        mean = jnp.mean(y, axis=0, keepdims=True)
        var = jnp.mean((y - mean) ** 2, axis=0, keepdims=True)
        y = (y - mean) * jax.lax.rsqrt(var + 1e-5)
    o_ref[0] = y.astype(o_ref.dtype)


def conv_block(x, w_oik, b, padding, *, relu=False, num_inorm=0):
    """PyTorch-equivalent Conv1d (channels-last) with optional fused ReLU and
    `num_inorm` rounds of (ReLU -> instance-norm). x: [B,T,Cin], w: [Cout,Cin,k]."""
    B, T, cin = x.shape
    cout, _, k = w_oik.shape
    t_out = T + 2 * padding - (k - 1)
    xp = jnp.pad(x, ((0, 0), (padding, padding), (0, 0))) if padding else x
    tp = T + 2 * padding
    w_kic = jnp.transpose(w_oik, (2, 1, 0))                # [k, Cin, Cout]
    return pl.pallas_call(
        functools.partial(_conv_block_kernel, k=k, t_out=t_out,
                          relu=relu, num_inorm=num_inorm),
        out_shape=jax.ShapeDtypeStruct((B, t_out, cout), F32),
        grid=(B,),
        in_specs=[
            pl.BlockSpec((1, tp, cin), lambda bi: (bi, 0, 0)),
            pl.BlockSpec((k, cin, cout), lambda bi: (0, 0, 0)),
            pl.BlockSpec((1, cout), lambda bi: (0, 0)),
        ],
        out_specs=pl.BlockSpec((1, t_out, cout), lambda bi: (bi, 0, 0)),
        compiler_params=pltpu.CompilerParams(
            dimension_semantics=("parallel",), vmem_limit_bytes=VMEM_LIMIT),
    )(xp, w_kic, b.reshape(1, cout))


# --------------- conv1d + residual + LayerNorm (FFN second conv) -------------- #

def _conv_res_ln_kernel(xp_ref, w_ref, b_ref, res_ref, g_ref, be_ref, o_ref, *, k, t_out):
    xp = xp_ref[0]
    cout = o_ref.shape[-1]
    acc = jnp.zeros((t_out, cout), jnp.float32)
    for j in range(k):
        acc = acc + jnp.dot(xp[j:j + t_out, :], w_ref[j],
                            preferred_element_type=jnp.float32)
    y = acc + b_ref[...] + res_ref[0]
    mean = jnp.mean(y, axis=-1, keepdims=True)
    var = jnp.mean((y - mean) ** 2, axis=-1, keepdims=True)
    o_ref[0] = ((y - mean) * jax.lax.rsqrt(var + 1e-5) * g_ref[...]
                + be_ref[...]).astype(o_ref.dtype)


def conv_res_ln(x, w_oik, b, padding, res, g, beta):
    """LayerNorm(conv1d(x) + res). x: [B,T,Fin], res: [B,T,Cout]."""
    B, T, fin = x.shape
    cout, _, k = w_oik.shape
    t_out = T + 2 * padding - (k - 1)
    xp = jnp.pad(x, ((0, 0), (padding, padding), (0, 0))) if padding else x
    tp = T + 2 * padding
    w_kic = jnp.transpose(w_oik, (2, 1, 0))
    return pl.pallas_call(
        functools.partial(_conv_res_ln_kernel, k=k, t_out=t_out),
        out_shape=jax.ShapeDtypeStruct((B, t_out, cout), F32),
        grid=(B,),
        in_specs=[
            pl.BlockSpec((1, tp, fin), lambda bi: (bi, 0, 0)),
            pl.BlockSpec((k, fin, cout), lambda bi: (0, 0, 0)),
            pl.BlockSpec((1, cout), lambda bi: (0, 0)),
            pl.BlockSpec((1, t_out, cout), lambda bi: (bi, 0, 0)),
            pl.BlockSpec((1, cout), lambda bi: (0, 0)),
            pl.BlockSpec((1, cout), lambda bi: (0, 0)),
        ],
        out_specs=pl.BlockSpec((1, t_out, cout), lambda bi: (bi, 0, 0)),
        compiler_params=pltpu.CompilerParams(
            dimension_semantics=("parallel",), vmem_limit_bytes=VMEM_LIMIT),
    )(xp, w_kic, b.reshape(1, cout), res, g.reshape(1, cout), beta.reshape(1, cout))


# ------------------- fused multi-head self-attention kernel ------------------- #

def _attn_kernel(qkv_ref, o_ref, *, n_head, d_k):
    qkv = qkv_ref[0]                                       # (T, 3*H*dk), q|k|v packed
    hdk = n_head * d_k
    scale = 1.0 / (d_k ** 0.5)
    for h in range(n_head):                                # heads handled in-kernel
        lo = h * d_k
        qh = qkv[:, lo:lo + d_k] * scale
        kh = qkv[:, hdk + lo:hdk + lo + d_k]
        vh = qkv[:, 2 * hdk + lo:2 * hdk + lo + d_k]
        s = jax.lax.dot_general(qh, kh, (((1,), (1,)), ((), ())),
                                preferred_element_type=jnp.float32)     # (T, T)
        s = s - jnp.max(s, axis=-1, keepdims=True)
        p = jnp.exp(s)
        p = p * pl.reciprocal(jnp.sum(p, axis=-1, keepdims=True), approx=True)
        o_ref[0, :, lo:lo + d_k] = jnp.dot(p, vh, preferred_element_type=jnp.float32)


def mha_attention(qkv, n_head, d_k):
    """qkv: [B, T, 3*H*dk] -> [B, T, H*dk]. (lens=None => no attention mask.)"""
    # TODO(synk): for long sequences add flash-style KV tiling; full (T,T) scores kept
    # here because eval T <= max_seq_len is small.
    B, T, three_hdk = qkv.shape
    hdk = n_head * d_k
    return pl.pallas_call(
        functools.partial(_attn_kernel, n_head=n_head, d_k=d_k),
        out_shape=jax.ShapeDtypeStruct((B, T, hdk), F32),
        grid=(B,),
        in_specs=[pl.BlockSpec((1, T, three_hdk), lambda bi: (bi, 0, 0))],
        out_specs=pl.BlockSpec((1, T, hdk), lambda bi: (bi, 0, 0)),
        compiler_params=pltpu.CompilerParams(
            dimension_semantics=("parallel",), vmem_limit_bytes=VMEM_LIMIT),
    )(qkv)


# --------------------- standalone ReLU + instance-norm ------------------------ #
# Only used when there are no ConvIN layers (otherwise fused into the last conv).

def _relu_in_kernel(x_ref, o_ref):
    x = jnp.maximum(x_ref[0], 0.0)
    mean = jnp.mean(x, axis=0, keepdims=True)
    var = jnp.mean((x - mean) ** 2, axis=0, keepdims=True)
    o_ref[0] = (x - mean) * jax.lax.rsqrt(var + 1e-5)


def relu_instance_norm(x):
    B, T, C = x.shape
    return pl.pallas_call(
        _relu_in_kernel,
        out_shape=jax.ShapeDtypeStruct((B, T, C), F32),
        grid=(B,),
        in_specs=[pl.BlockSpec((1, T, C), lambda bi: (bi, 0, 0))],
        out_specs=pl.BlockSpec((1, T, C), lambda bi: (bi, 0, 0)),
        compiler_params=pltpu.CompilerParams(
            dimension_semantics=("parallel",), vmem_limit_bytes=VMEM_LIMIT),
    )(x)


# -------------------------------- pos enc ------------------------------------ #

def get_sinusoid_encoding_table(n_position, d_hid):
    position = jnp.arange(n_position, dtype=F32)[:, None]
    div = jnp.power(10000.0, 2.0 * (jnp.arange(d_hid) // 2).astype(F32) / d_hid)
    angle = position / div
    table = jnp.zeros((n_position, d_hid), F32)
    table = table.at[:, 0::2].set(jnp.sin(angle[:, 0::2]))
    table = table.at[:, 1::2].set(jnp.cos(angle[:, 1::2]))
    return table


# ------------------------------ parameters ------------------------------------ #

def init_params(key, in_channels, h_channels, conv_kernels, sa_hidden, sa_layer,
                sa_head, sa_filter_size, sa_kernel_size, out_channels, max_seq_len):
    keys = iter(jax.random.split(key, 256))

    def nrm(shape, scale=0.1):
        return scale * jax.random.normal(next(keys), shape, dtype=F32)

    d_k = sa_hidden // sa_head
    p = {
        "conv_init_w": nrm((h_channels, in_channels, 1)),
        "conv_init_b": nrm((h_channels,)),
        "conv_layers": [(nrm((h_channels, h_channels, k)), nrm((h_channels,)))
                        for k in conv_kernels],
        "pos_enc": get_sinusoid_encoding_table(max_seq_len + 1, sa_hidden)[None],
        "mu_logs_w": nrm((2 * out_channels, sa_hidden, 1)),
        "mu_logs_b": nrm((2 * out_channels,)),
        "fft_layers": [],
    }
    for _ in range(sa_layer):
        p["fft_layers"].append(dict(
            wq=nrm((sa_hidden, sa_head * d_k)), bq=nrm((sa_head * d_k,)),
            wk=nrm((sa_hidden, sa_head * d_k)), bk=nrm((sa_head * d_k,)),
            wv=nrm((sa_hidden, sa_head * d_k)), bv=nrm((sa_head * d_k,)),
            wo=nrm((sa_head * d_k, sa_hidden)), bo=nrm((sa_hidden,)),
            ln1_g=jnp.ones((sa_hidden,), F32), ln1_b=jnp.zeros((sa_hidden,), F32),
            ffn_w1=nrm((sa_filter_size, sa_hidden, sa_kernel_size)),
            ffn_b1=nrm((sa_filter_size,)),
            ffn_w2=nrm((sa_hidden, sa_filter_size, sa_kernel_size)),
            ffn_b2=nrm((sa_hidden,)),
            ln2_g=jnp.ones((sa_hidden,), F32), ln2_b=jnp.zeros((sa_hidden,), F32),
        ))
    return p


# -------------------------------- forward ------------------------------------- #

def make_forward(conv_paddings, sa_head, sa_kernel_size, out_channels, max_seq_len):
    pad_ffn = (sa_kernel_size - 1) // 2

    def forward(params, x):
        """x: [B, C_in, T] (PyTorch NCW). lens=None => no masking anywhere.
        Returns mu, log_std each [B, out_channels, T]."""
        B, _, T = x.shape
        h = jnp.transpose(x, (0, 2, 1))                                  # [B, T, Cin]
        # init conv is 1x1 -> plain row-tiled matmul.
        w0 = params["conv_init_w"][:, :, 0].T                            # [Cin, H]
        h = matmul_bias(h.reshape(B * T, -1), w0,
                        params["conv_init_b"]).reshape(B, T, -1)
        # TODO(synk): ConvINBlk source not provided; assumed conv -> activation -> masked IN.
        n_conv = len(params["conv_layers"])
        for idx, ((w, b), pad) in enumerate(zip(params["conv_layers"], conv_paddings)):
            # module applies (ReLU+IN) per block AND once after the stack; the trailing
            # pass is fused into the last block's epilogue (num_inorm=2), same math.
            n_in = 2 if idx == n_conv - 1 else 1
            h = conv_block(h, w, b, pad, relu=False, num_inorm=n_in)
        if n_conv == 0:
            h = relu_instance_norm(h)

        T_use = min(T, max_seq_len)                                      # eval path
        dec = h[:, :T_use, :] + params["pos_enc"][:, :T_use, :]
        D = dec.shape[-1]
        d_k = D // sa_head
        hdk = sa_head * d_k
        for lp in params["fft_layers"]:
            Bc, Tc, _ = dec.shape
            x2 = dec.reshape(Bc * Tc, D)
            # ---- multi-head self-attention, fused QKV projection ----
            wqkv = jnp.concatenate([lp["wq"], lp["wk"], lp["wv"]], axis=1)   # [D, 3*H*dk]
            bqkv = jnp.concatenate([lp["bq"], lp["bk"], lp["bv"]], axis=0)
            qkv = matmul_bias(x2, wqkv, bqkv).reshape(Bc, Tc, 3 * hdk)
            oh = mha_attention(qkv, sa_head, d_k)                            # [B, T, H*dk]
            # output projection + residual + post-LN (fused)
            o = matmul_bias_res_ln(oh.reshape(Bc * Tc, hdk), lp["wo"], lp["bo"],
                                   x2, lp["ln1_g"], lp["ln1_b"])
            # ---- position-wise FFN: conv(k)+ReLU, then conv(k)+residual+LN ----
            hb = o.reshape(Bc, Tc, D)
            f1 = conv_block(hb, lp["ffn_w1"], lp["ffn_b1"], pad_ffn,
                            relu=True, num_inorm=0)
            dec = conv_res_ln(f1, lp["ffn_w2"], lp["ffn_b2"], pad_ffn,
                              hb, lp["ln2_g"], lp["ln2_b"])
        Bc, Tc, _ = dec.shape
        wml = params["mu_logs_w"][:, :, 0].T                              # [D, 2*out]
        ml = matmul_bias(dec.reshape(Bc * Tc, D), wml,
                         params["mu_logs_b"]).reshape(Bc, Tc, -1)
        ml = jnp.transpose(ml, (0, 2, 1))                                 # [B, 2*out, T]
        mu = ml[:, :out_channels, :]
        log_std = ml[:, out_channels:, :]
        return mu, log_std

    return jax.jit(forward)


# ---------------------------------- main --------------------------------------- #

if __name__ == "__main__":
    # Small configuration consistent with the module's constructor.
    B, in_channels, T = 2, 4, 8
    h_channels = 32
    conv_kernels = (3, 3)
    paddings = (1, 1)
    sa_hidden = 32
    sa_layer = 2
    sa_head = 2
    sa_filter_size = 64
    sa_kernel_size = 3
    out_channels = 4
    max_seq_len = 16

    key = jax.random.PRNGKey(0)
    pkey, xkey = jax.random.split(key)
    params = init_params(pkey, in_channels, h_channels, conv_kernels, sa_hidden,
                         sa_layer, sa_head, sa_filter_size, sa_kernel_size,
                         out_channels, max_seq_len)
    x = jax.random.normal(xkey, (B, in_channels, T), dtype=F32)

    fwd = make_forward(paddings, sa_head, sa_kernel_size, out_channels, max_seq_len)
    mu, log_std = fwd(params, x)
    jax.block_until_ready((mu, log_std))

    assert mu.shape == (B, out_channels, T), mu.shape
    assert log_std.shape == (B, out_channels, T), log_std.shape
    assert bool(jnp.all(jnp.isfinite(mu))) and bool(jnp.all(jnp.isfinite(log_std)))
    print("KERNEL_OK")
</pallas_src>

<mosaic_0001>
module attributes {stable_mosaic.version = 11 : i64} {
  func.func @_mm_bias_kernel(%arg0: i32, %arg1: i32, %arg2: i32, %arg3: memref<16x4xf32, #tpu.memory_space<vmem>>, %arg4: memref<4x32xf32, #tpu.memory_space<vmem>>, %arg5: memref<1x32xf32, #tpu.memory_space<vmem>>, %arg6: memref<16x32xf32, #tpu.memory_space<vmem>>, %arg7: memref<16x32xf32, #tpu.memory_space<vmem>>) attributes {dimension_semantics = [#tpu.dimension_semantics<parallel>, #tpu.dimension_semantics<parallel>, #tpu.dimension_semantics<arbitrary>], iteration_bounds = array<i64: 1, 1, 1>, scalar_prefetch = 0 : i64, scratch_operands = 1 : i64, tpu.core_type = #tpu.core_type<tc>, window_params = [{transform_indices = @transform_0, window_bounds = array<i64: 16, 4>}, {transform_indices = @transform_1, window_bounds = array<i64: 4, 32>}, {transform_indices = @transform_2, window_bounds = array<i64: 1, 32>}, {transform_indices = @transform_3, window_bounds = array<i64: 16, 32>}]} {
    %c0_i32 = arith.constant 0 : i32
    %0 = arith.cmpi eq, %arg2, %c0_i32 : i32
    %1 = arith.extui %0 : i1 to i32
    %c0_i32_0 = arith.constant 0 : i32
    %2 = arith.cmpi ne, %1, %c0_i32_0 : i32
    scf.if %2 {
      %cst_10 = arith.constant 0.000000e+00 : f32
      %12 = vector.broadcast %cst_10 : f32 to vector<16x32xf32>
      %c0_11 = arith.constant 0 : index
      %c0_12 = arith.constant 0 : index
      %13 = vector.load %arg7[%c0_11, %c0_12] : memref<16x32xf32, #tpu.memory_space<vmem>>, vector<16x32xf32>
      tpu.vector_store %arg7[%c0_11, %c0_12], %12 {strides = array<i32>} : memref<16x32xf32, #tpu.memory_space<vmem>>, vector<16x32xf32>,
    } else {
    }
    %c0 = arith.constant 0 : index
    %c0_1 = arith.constant 0 : index
    %3 = vector.load %arg7[%c0, %c0_1] : memref<16x32xf32, #tpu.memory_space<vmem>>, vector<16x32xf32>
    %c0_2 = arith.constant 0 : index
    %c0_3 = arith.constant 0 : index
    %4 = vector.load %arg3[%c0_2, %c0_3] : memref<16x4xf32, #tpu.memory_space<vmem>>, vector<16x4xf32>
    %c0_4 = arith.constant 0 : index
    %c0_5 = arith.constant 0 : index
    %5 = vector.load %arg4[%c0_4, %c0_5] : memref<4x32xf32, #tpu.memory_space<vmem>>, vector<4x32xf32>
    %cst = arith.constant dense<0.000000e+00> : vector<16x32xf32>
    %6 = tpu.matmul %4, %5, %cst {dimension_numbers = #tpu.dot_dimension_numbers<[1], [0], [0], [1], [0, 0, 1, 1], [], []>} : vector<16x4xf32>, vector<4x32xf32>, vector<16x32xf32> -> vector<16x32xf32>
    %7 = arith.addf %3, %6 : vector<16x32xf32>
    %c0_6 = arith.constant 0 : index
    %c0_7 = arith.constant 0 : index
    %8 = vector.load %arg7[%c0_6, %c0_7] : memref<16x32xf32, #tpu.memory_space<vmem>>, vector<16x32xf32>
    tpu.vector_store %arg7[%c0_6, %c0_7], %7 {strides = array<i32>} : memref<16x32xf32, #tpu.memory_space<vmem>>, vector<16x32xf32>,
    %c0_i32_8 = arith.constant 0 : i32
    %9 = arith.cmpi eq, %arg2, %c0_i32_8 : i32
    %10 = arith.extui %9 : i1 to i32
    %c0_i32_9 = arith.constant 0 : i32
    %11 = arith.cmpi ne, %10, %c0_i32_9 : i32
    scf.if %11 {
      %c0_10 = arith.constant 0 : index
      %c0_11 = arith.constant 0 : index
      %12 = vector.load %arg7[%c0_10, %c0_11] : memref<16x32xf32, #tpu.memory_space<vmem>>, vector<16x32xf32>
      %c0_12 = arith.constant 0 : index
      %c0_13 = arith.constant 0 : index
      %13 = vector.load %arg5[%c0_12, %c0_13] : memref<1x32xf32, #tpu.memory_space<vmem>>, vector<1x32xf32>
      %14 = vector.broadcast %13 : vector<1x32xf32> to vector<16x32xf32>
      %15 = arith.addf %12, %14 : vector<16x32xf32>
      %c0_14 = arith.constant 0 : index
      %c0_15 = arith.constant 0 : index
      %16 = vector.load %arg6[%c0_14, %c0_15] : memref<16x32xf32, #tpu.memory_space<vmem>>, vector<16x32xf32>
      tpu.vector_store %arg6[%c0_14, %c0_15], %15 {strides = array<i32>} : memref<16x32xf32, #tpu.memory_space<vmem>>, vector<16x32xf32>,
    } else {
    }
    return
  }
  func.func @transform_0(%arg0: i32, %arg1: i32, %arg2: i32) -> (i32, i32) {
    %c0_i32 = arith.constant 0 : i32
    return %arg0, %arg2 : i32, i32
  }
  func.func @transform_1(%arg0: i32, %arg1: i32, %arg2: i32) -> (i32, i32) {
    %c0_i32 = arith.constant 0 : i32
    return %arg2, %arg1 : i32, i32
  }
  func.func @transform_2(%arg0: i32, %arg1: i32, %arg2: i32) -> (i32, i32) {
    %c0_i32 = arith.constant 0 : i32
    %c0_i32_0 = arith.constant 0 : i32
    return %c0_i32, %arg1 : i32, i32
  }
  func.func @transform_3(%arg0: i32, %arg1: i32, %arg2: i32) -> (i32, i32) {
    %c0_i32 = arith.constant 0 : i32
    return %arg0, %arg1 : i32, i32
  }
}

module attributes {stable_mosaic.version = 11 : i64} {
  func.func @_conv_block_kernel(%arg0: i32, %arg1: memref<1x10x32xf32, #tpu.memory_space<vmem>>, %arg2: memref<3x32x32xf32, #tpu.memory_space<vmem>>, %arg3: memref<1x32xf32, #tpu.memory_space<vmem>>, %arg4: memref<1x8x32xf32, #tpu.memory_space<vmem>>) attributes {dimension_semantics = [#tpu.dimension_semantics<parallel>], iteration_bounds = array<i64: 2>, scalar_prefetch = 0 : i64, scratch_operands = 0 : i64, tpu.core_type = #tpu.core_type<tc>, window_params = [{transform_indices = @transform_0, window_bounds = array<i64: 1, 10, 32>}, {pipeline_mode = #tpu.pipeline_mode<synchronous>, transform_indices = @transform_1, window_bounds = array<i64: 3, 32, 32>}, {pipeline_mode = #tpu.pipeline_mode<synchronous>, transform_indices = @transform_2, window_bounds = array<i64: 1, 32>}, {transform_indices = @transform_3, window_bounds = array<i64: 1, 8, 32>}]} {
    %c0 = arith.constant 0 : index
    %c0_0 = arith.constant 0 : index
    %c0_1 = arith.constant 0 : index
    %0 = vector.load %arg1[%c0, %c0_0, %c0_1] : memref<1x10x32xf32, #tpu.memory_space<vmem>>, vector<1x10x32xf32>
    %1 = vector.shape_cast %0 : vector<1x10x32xf32> to vector<10x32xf32>
    %cst = arith.constant 0.000000e+00 : f32
    %2 = vector.broadcast %cst : f32 to vector<8x32xf32>
    %3 = vector.extract_strided_slice %1 {offsets = [0, 0], sizes = [8, 32], strides = [1, 1]} : vector<10x32xf32> to vector<8x32xf32>
    %c0_2 = arith.constant 0 : index
    %c0_3 = arith.constant 0 : index
    %c0_4 = arith.constant 0 : index
    %4 = vector.load %arg2[%c0_2, %c0_3, %c0_4] : memref<3x32x32xf32, #tpu.memory_space<vmem>>, vector<1x32x32xf32>
    %5 = vector.shape_cast %4 : vector<1x32x32xf32> to vector<32x32xf32>
    %cst_5 = arith.constant dense<0.000000e+00> : vector<8x32xf32>
    %6 = tpu.matmul %3, %5, %cst_5 {dimension_numbers = #tpu.dot_dimension_numbers<[1], [0], [0], [1], [0, 0, 1, 1], [], []>} : vector<8x32xf32>, vector<32x32xf32>, vector<8x32xf32> -> vector<8x32xf32>
    %7 = arith.addf %2, %6 : vector<8x32xf32>
    %8 = vector.extract_strided_slice %1 {offsets = [1, 0], sizes = [8, 32], strides = [1, 1]} : vector<10x32xf32> to vector<8x32xf32>
    %c1 = arith.constant 1 : index
    %c0_6 = arith.constant 0 : index
    %c0_7 = arith.constant 0 : index
    %9 = vector.load %arg2[%c1, %c0_6, %c0_7] : memref<3x32x32xf32, #tpu.memory_space<vmem>>, vector<1x32x32xf32>
    %10 = vector.shape_cast %9 : vector<1x32x32xf32> to vector<32x32xf32>
    %cst_8 = arith.constant dense<0.000000e+00> : vector<8x32xf32>
    %11 = tpu.matmul %8, %10, %cst_8 {dimension_numbers = #tpu.dot_dimension_numbers<[1], [0], [0], [1], [0, 0, 1, 1], [], []>} : vector<8x32xf32>, vector<32x32xf32>, vector<8x32xf32> -> vector<8x32xf32>
    %12 = arith.addf %7, %11 : vector<8x32xf32>
    %13 = vector.extract_strided_slice %1 {offsets = [2, 0], sizes = [8, 32], strides = [1, 1]} : vector<10x32xf32> to vector<8x32xf32>
    %c2 = arith.constant 2 : index
    %c0_9 = arith.constant 0 : index
    %c0_10 = arith.constant 0 : index
    %14 = vector.load %arg2[%c2, %c0_9, %c0_10] : memref<3x32x32xf32, #tpu.memory_space<vmem>>, vector<1x32x32xf32>
    %15 = vector.shape_cast %14 : vector<1x32x32xf32> to vector<32x32xf32>
    %cst_11 = arith.constant dense<0.000000e+00> : vector<8x32xf32>
    %16 = tpu.matmul %13, %15, %cst_11 {dimension_numbers = #tpu.dot_dimension_numbers<[1], [0], [0], [1], [0, 0, 1, 1], [], []>} : vector<8x32xf32>, vector<32x32xf32>, vector<8x32xf32> -> vector<8x32xf32>
    %17 = arith.addf %12, %16 : vector<8x32xf32>
    %c0_12 = arith.constant 0 : index
    %c0_13 = arith.constant 0 : index
    %18 = vector.load %arg3[%c0_12, %c0_13] : memref<1x32xf32, #tpu.memory_space<vmem>>, vector<1x32xf32>
    %19 = vector.broadcast %18 : vector<1x32xf32> to vector<8x32xf32>
    %20 = arith.addf %17, %19 : vector<8x32xf32>
    %cst_14 = arith.constant 0.000000e+00 : f32
    %21 = vector.broadcast %cst_14 : f32 to vector<8x32xf32>
    %22 = arith.maximumf %20, %21 : vector<8x32xf32>
    %cst_15 = arith.constant dense<0.000000e+00> : vector<32xf32>
    %23 = vector.multi_reduction <add>, %22, %cst_15 [0] : vector<8x32xf32> to vector<32xf32>
    %24 = vector.shape_cast %23 : vector<32xf32> to vector<1x32xf32>
    %cst_16 = arith.constant 8.000000e+00 : f32
    %25 = vector.broadcast %cst_16 : f32 to vector<1x32xf32>
    %26 = arith.divf %24, %25 : vector<1x32xf32>
    %27 = vector.broadcast %26 : vector<1x32xf32> to vector<8x32xf32>
    %28 = arith.subf %22, %27 : vector<8x32xf32>
    %29 = arith.mulf %28, %28 : vector<8x32xf32>
    %cst_17 = arith.constant dense<0.000000e+00> : vector<32xf32>
    %30 = vector.multi_reduction <add>, %29, %cst_17 [0] : vector<8x32xf32> to vector<32xf32>
    %31 = vector.shape_cast %30 : vector<32xf32> to vector<1x32xf32>
    %cst_18 = arith.constant 8.000000e+00 : f32
    %32 = vector.broadcast %cst_18 : f32 to vector<1x32xf32>
    %33 = arith.divf %31, %32 : vector<1x32xf32>
    %34 = vector.broadcast %26 : vector<1x32xf32> to vector<8x32xf32>
    %35 = arith.subf %22, %34 : vector<8x32xf32>
    %cst_19 = arith.constant 9.99999974E-6 : f32
    %36 = vector.broadcast %cst_19 : f32 to vector<1x32xf32>
    %37 = arith.addf %33, %36 : vector<1x32xf32>
    %38 = math.rsqrt %37 : vector<1x32xf32>
    %39 = vector.broadcast %38 : vector<1x32xf32> to vector<8x32xf32>
    %40 = arith.mulf %35, %39 : vector<8x32xf32>
    %cst_20 = arith.constant 0.000000e+00 : f32
    %41 = vector.broadcast %cst_20 : f32 to vector<8x32xf32>
    %42 = arith.maximumf %40, %41 : vector<8x32xf32>
    %cst_21 = arith.constant dense<0.000000e+00> : vector<32xf32>
    %43 = vector.multi_reduction <add>, %42, %cst_21 [0] : vector<8x32xf32> to vector<32xf32>
    %44 = vector.shape_cast %43 : vector<32xf32> to vector<1x32xf32>
    %cst_22 = arith.constant 8.000000e+00 : f32
    %45 = vector.broadcast %cst_22 : f32 to vector<1x32xf32>
    %46 = arith.divf %44, %45 : vector<1x32xf32>
    %47 = vector.broadcast %46 : vector<1x32xf32> to vector<8x32xf32>
    %48 = arith.subf %42, %47 : vector<8x32xf32>
    %49 = arith.mulf %48, %48 : vector<8x32xf32>
    %cst_23 = arith.constant dense<0.000000e+00> : vector<32xf32>
    %50 = vector.multi_reduction <add>, %49, %cst_23 [0] : vector<8x32xf32> to vector<32xf32>
    %51 = vector.shape_cast %50 : vector<32xf32> to vector<1x32xf32>
    %cst_24 = arith.constant 8.000000e+00 : f32
    %52 = vector.broadcast %cst_24 : f32 to vector<1x32xf32>
    %53 = arith.divf %51, %52 : vector<1x32xf32>
    %54 = vector.broadcast %46 : vector<1x32xf32> to vector<8x32xf32>
    %55 = arith.subf %42, %54 : vector<8x32xf32>
    %cst_25 = arith.constant 9.99999974E-6 : f32
    %56 = vector.broadcast %cst_25 : f32 to vector<1x32xf32>
    %57 = arith.addf %53, %56 : vector<1x32xf32>
    %58 = math.rsqrt %57 : vector<1x32xf32>
    %59 = vector.broadcast %58 : vector<1x32xf32> to vector<8x32xf32>
    %60 = arith.mulf %55, %59 : vector<8x32xf32>
    %c0_26 = arith.constant 0 : index
    %c0_27 = arith.constant 0 : index
    %c0_28 = arith.constant 0 : index
    %61 = vector.load %arg4[%c0_26, %c0_27, %c0_28] : memref<1x8x32xf32, #tpu.memory_space<vmem>>, vector<1x8x32xf32>
    %62 = vector.shape_cast %61 : vector<1x8x32xf32> to vector<8x32xf32>
    %63 = vector.shape_cast %60 : vector<8x32xf32> to vector<1x8x32xf32>
    tpu.vector_store %arg4[%c0_26, %c0_27, %c0_28], %63 {strides = array<i32>} : memref<1x8x32xf32, #tpu.memory_space<vmem>>, vector<1x8x32xf32>,
    return
  }
  func.func @transform_0(%arg0: i32) -> (i32, i32, i32) {
    %c0_i32 = arith.constant 0 : i32
    %c0_i32_0 = arith.constant 0 : i32
    %c0_i32_1 = arith.constant 0 : i32
    return %arg0, %c0_i32, %c0_i32_0 : i32, i32, i32
  }
  func.func @transform_1(%arg0: i32) -> (i32, i32, i32) {
    %c0_i32 = arith.constant 0 : i32
    %c0_i32_0 = arith.constant 0 : i32
    %c0_i32_1 = arith.constant 0 : i32
    %c0_i32_2 = arith.constant 0 : i32
    return %c0_i32, %c0_i32_0, %c0_i32_1 : i32, i32, i32
  }
  func.func @transform_2(%arg0: i32) -> (i32, i32) {
    %c0_i32 = arith.constant 0 : i32
    %c0_i32_0 = arith.constant 0 : i32
    %c0_i32_1 = arith.constant 0 : i32
    return %c0_i32, %c0_i32_0 : i32, i32
  }
  func.func @transform_3(%arg0: i32) -> (i32, i32, i32) {
    %c0_i32 = arith.constant 0 : i32
    %c0_i32_0 = arith.constant 0 : i32
    %c0_i32_1 = arith.constant 0 : i32
    return %arg0, %c0_i32, %c0_i32_0 : i32, i32, i32
  }
}

module attributes {stable_mosaic.version = 11 : i64} {
  func.func @_conv_block_kernel(%arg0: i32, %arg1: memref<1x10x32xf32, #tpu.memory_space<vmem>>, %arg2: memref<3x32x32xf32, #tpu.memory_space<vmem>>, %arg3: memref<1x32xf32, #tpu.memory_space<vmem>>, %arg4: memref<1x8x32xf32, #tpu.memory_space<vmem>>) attributes {dimension_semantics = [#tpu.dimension_semantics<parallel>], iteration_bounds = array<i64: 2>, scalar_prefetch = 0 : i64, scratch_operands = 0 : i64, tpu.core_type = #tpu.core_type<tc>, window_params = [{transform_indices = @transform_0, window_bounds = array<i64: 1, 10, 32>}, {pipeline_mode = #tpu.pipeline_mode<synchronous>, transform_indices = @transform_1, window_bounds = array<i64: 3, 32, 32>}, {pipeline_mode = #tpu.pipeline_mode<synchronous>, transform_indices = @transform_2, window_bounds = array<i64: 1, 32>}, {transform_indices = @transform_3, window_bounds = array<i64: 1, 8, 32>}]} {
    %c0 = arith.constant 0 : index
    %c0_0 = arith.constant 0 : index
    %c0_1 = arith.constant 0 : index
    %0 = vector.load %arg1[%c0, %c0_0, %c0_1] : memref<1x10x32xf32, #tpu.memory_space<vmem>>, vector<1x10x32xf32>
    %1 = vector.shape_cast %0 : vector<1x10x32xf32> to vector<10x32xf32>
    %cst = arith.constant 0.000000e+00 : f32
    %2 = vector.broadcast %cst : f32 to vector<8x32xf32>
    %3 = vector.extract_strided_slice %1 {offsets = [0, 0], sizes = [8, 32], strides = [1, 1]} : vector<10x32xf32> to vector<8x32xf32>
    %c0_2 = arith.constant 0 : index
    %c0_3 = arith.constant 0 : index
    %c0_4 = arith.constant 0 : index
    %4 = vector.load %arg2[%c0_2, %c0_3, %c0_4] : memref<3x32x32xf32, #tpu.memory_space<vmem>>, vector<1x32x32xf32>
    %5 = vector.shape_cast %4 : vector<1x32x32xf32> to vector<32x32xf32>
    %cst_5 = arith.constant dense<0.000000e+00> : vector<8x32xf32>
    %6 = tpu.matmul %3, %5, %cst_5 {dimension_numbers = #tpu.dot_dimension_numbers<[1], [0], [0], [1], [0, 0, 1, 1], [], []>} : vector<8x32xf32>, vector<32x32xf32>, vector<8x32xf32> -> vector<8x32xf32>
    %7 = arith.addf %2, %6 : vector<8x32xf32>
    %8 = vector.extract_strided_slice %1 {offsets = [1, 0], sizes = [8, 32], strides = [1, 1]} : vector<10x32xf32> to vector<8x32xf32>
    %c1 = arith.constant 1 : index
    %c0_6 = arith.constant 0 : index
    %c0_7 = arith.constant 0 : index
    %9 = vector.load %arg2[%c1, %c0_6, %c0_7] : memref<3x32x32xf32, #tpu.memory_space<vmem>>, vector<1x32x32xf32>
    %10 = vector.shape_cast %9 : vector<1x32x32xf32> to vector<32x32xf32>
    %cst_8 = arith.constant dense<0.000000e+00> : vector<8x32xf32>
    %11 = tpu.matmul %8, %10, %cst_8 {dimension_numbers = #tpu.dot_dimension_numbers<[1], [0], [0], [1], [0, 0, 1, 1], [], []>} : vector<8x32xf32>, vector<32x32xf32>, vector<8x32xf32> -> vector<8x32xf32>
    %12 = arith.addf %7, %11 : vector<8x32xf32>
    %13 = vector.extract_strided_slice %1 {offsets = [2, 0], sizes = [8, 32], strides = [1, 1]} : vector<10x32xf32> to vector<8x32xf32>
    %c2 = arith.constant 2 : index
    %c0_9 = arith.constant 0 : index
    %c0_10 = arith.constant 0 : index
    %14 = vector.load %arg2[%c2, %c0_9, %c0_10] : memref<3x32x32xf32, #tpu.memory_space<vmem>>, vector<1x32x32xf32>
    %15 = vector.shape_cast %14 : vector<1x32x32xf32> to vector<32x32xf32>
    %cst_11 = arith.constant dense<0.000000e+00> : vector<8x32xf32>
    %16 = tpu.matmul %13, %15, %cst_11 {dimension_numbers = #tpu.dot_dimension_numbers<[1], [0], [0], [1], [0, 0, 1, 1], [], []>} : vector<8x32xf32>, vector<32x32xf32>, vector<8x32xf32> -> vector<8x32xf32>
    %17 = arith.addf %12, %16 : vector<8x32xf32>
    %c0_12 = arith.constant 0 : index
    %c0_13 = arith.constant 0 : index
    %18 = vector.load %arg3[%c0_12, %c0_13] : memref<1x32xf32, #tpu.memory_space<vmem>>, vector<1x32xf32>
    %19 = vector.broadcast %18 : vector<1x32xf32> to vector<8x32xf32>
    %20 = arith.addf %17, %19 : vector<8x32xf32>
    %cst_14 = arith.constant 0.000000e+00 : f32
    %21 = vector.broadcast %cst_14 : f32 to vector<8x32xf32>
    %22 = arith.maximumf %20, %21 : vector<8x32xf32>
    %cst_15 = arith.constant dense<0.000000e+00> : vector<32xf32>
    %23 = vector.multi_reduction <add>, %22, %cst_15 [0] : vector<8x32xf32> to vector<32xf32>
    %24 = vector.shape_cast %23 : vector<32xf32> to vector<1x32xf32>
    %cst_16 = arith.constant 8.000000e+00 : f32
    %25 = vector.broadcast %cst_16 : f32 to vector<1x32xf32>
    %26 = arith.divf %24, %25 : vector<1x32xf32>
    %27 = vector.broadcast %26 : vector<1x32xf32> to vector<8x32xf32>
    %28 = arith.subf %22, %27 : vector<8x32xf32>
    %29 = arith.mulf %28, %28 : vector<8x32xf32>
    %cst_17 = arith.constant dense<0.000000e+00> : vector<32xf32>
    %30 = vector.multi_reduction <add>, %29, %cst_17 [0] : vector<8x32xf32> to vector<32xf32>
    %31 = vector.shape_cast %30 : vector<32xf32> to vector<1x32xf32>
    %cst_18 = arith.constant 8.000000e+00 : f32
    %32 = vector.broadcast %cst_18 : f32 to vector<1x32xf32>
    %33 = arith.divf %31, %32 : vector<1x32xf32>
    %34 = vector.broadcast %26 : vector<1x32xf32> to vector<8x32xf32>
    %35 = arith.subf %22, %34 : vector<8x32xf32>
    %cst_19 = arith.constant 9.99999974E-6 : f32
    %36 = vector.broadcast %cst_19 : f32 to vector<1x32xf32>
    %37 = arith.addf %33, %36 : vector<1x32xf32>
    %38 = math.rsqrt %37 : vector<1x32xf32>
    %39 = vector.broadcast %38 : vector<1x32xf32> to vector<8x32xf32>
    %40 = arith.mulf %35, %39 : vector<8x32xf32>
    %c0_20 = arith.constant 0 : index
    %c0_21 = arith.constant 0 : index
    %c0_22 = arith.constant 0 : index
    %41 = vector.load %arg4[%c0_20, %c0_21, %c0_22] : memref<1x8x32xf32, #tpu.memory_space<vmem>>, vector<1x8x32xf32>
    %42 = vector.shape_cast %41 : vector<1x8x32xf32> to vector<8x32xf32>
    %43 = vector.shape_cast %40 : vector<8x32xf32> to vector<1x8x32xf32>
    tpu.vector_store %arg4[%c0_20, %c0_21, %c0_22], %43 {strides = array<i32>} : memref<1x8x32xf32, #tpu.memory_space<vmem>>, vector<1x8x32xf32>,
    return
  }
  func.func @transform_0(%arg0: i32) -> (i32, i32, i32) {
    %c0_i32 = arith.constant 0 : i32
    %c0_i32_0 = arith.constant 0 : i32
    %c0_i32_1 = arith.constant 0 : i32
    return %arg0, %c0_i32, %c0_i32_0 : i32, i32, i32
  }
  func.func @transform_1(%arg0: i32) -> (i32, i32, i32) {
    %c0_i32 = arith.constant 0 : i32
    %c0_i32_0 = arith.constant 0 : i32
    %c0_i32_1 = arith.constant 0 : i32
    %c0_i32_2 = arith.constant 0 : i32
    return %c0_i32, %c0_i32_0, %c0_i32_1 : i32, i32, i32
  }
  func.func @transform_2(%arg0: i32) -> (i32, i32) {
    %c0_i32 = arith.constant 0 : i32
    %c0_i32_0 = arith.constant 0 : i32
    %c0_i32_1 = arith.constant 0 : i32
    return %c0_i32, %c0_i32_0 : i32, i32
  }
  func.func @transform_3(%arg0: i32) -> (i32, i32, i32) {
    %c0_i32 = arith.constant 0 : i32
    %c0_i32_0 = arith.constant 0 : i32
    %c0_i32_1 = arith.constant 0 : i32
    return %arg0, %c0_i32, %c0_i32_0 : i32, i32, i32
  }
}

module attributes {stable_mosaic.version = 11 : i64} {
  func.func @_mm_bias_kernel(%arg0: i32, %arg1: i32, %arg2: i32, %arg3: memref<16x32xf32, #tpu.memory_space<vmem>>, %arg4: memref<32x96xf32, #tpu.memory_space<vmem>>, %arg5: memref<1x96xf32, #tpu.memory_space<vmem>>, %arg6: memref<16x96xf32, #tpu.memory_space<vmem>>, %arg7: memref<16x96xf32, #tpu.memory_space<vmem>>) attributes {dimension_semantics = [#tpu.dimension_semantics<parallel>, #tpu.dimension_semantics<parallel>, #tpu.dimension_semantics<arbitrary>], iteration_bounds = array<i64: 1, 1, 1>, scalar_prefetch = 0 : i64, scratch_operands = 1 : i64, tpu.core_type = #tpu.core_type<tc>, window_params = [{transform_indices = @transform_0, window_bounds = array<i64: 16, 32>}, {transform_indices = @transform_1, window_bounds = array<i64: 32, 96>}, {transform_indices = @transform_2, window_bounds = array<i64: 1, 96>}, {transform_indices = @transform_3, window_bounds = array<i64: 16, 96>}]} {
    %c0_i32 = arith.constant 0 : i32
    %0 = arith.cmpi eq, %arg2, %c0_i32 : i32
    %1 = arith.extui %0 : i1 to i32
    %c0_i32_0 = arith.constant 0 : i32
    %2 = arith.cmpi ne, %1, %c0_i32_0 : i32
    scf.if %2 {
      %cst_10 = arith.constant 0.000000e+00 : f32
      %12 = vector.broadcast %cst_10 : f32 to vector<16x96xf32>
      %c0_11 = arith.constant 0 : index
      %c0_12 = arith.constant 0 : index
      %13 = vector.load %arg7[%c0_11, %c0_12] : memref<16x96xf32, #tpu.memory_space<vmem>>, vector<16x96xf32>
      tpu.vector_store %arg7[%c0_11, %c0_12], %12 {strides = array<i32>} : memref<16x96xf32, #tpu.memory_space<vmem>>, vector<16x96xf32>,
    } else {
    }
    %c0 = arith.constant 0 : index
    %c0_1 = arith.constant 0 : index
    %3 = vector.load %arg7[%c0, %c0_1] : memref<16x96xf32, #tpu.memory_space<vmem>>, vector<16x96xf32>
    %c0_2 = arith.constant 0 : index
    %c0_3 = arith.constant 0 : index
    %4 = vector.load %arg3[%c0_2, %c0_3] : memref<16x32xf32, #tpu.memory_space<vmem>>, vector<16x32xf32>
    %c0_4 = arith.constant 0 : index
    %c0_5 = arith.constant 0 : index
    %5 = vector.load %arg4[%c0_4, %c0_5] : memref<32x96xf32, #tpu.memory_space<vmem>>, vector<32x96xf32>
    %cst = arith.constant dense<0.000000e+00> : vector<16x96xf32>
    %6 = tpu.matmul %4, %5, %cst {dimension_numbers = #tpu.dot_dimension_numbers<[1], [0], [0], [1], [0, 0, 1, 1], [], []>} : vector<16x32xf32>, vector<32x96xf32>, vector<16x96xf32> -> vector<16x96xf32>
    %7 = arith.addf %3, %6 : vector<16x96xf32>
    %c0_6 = arith.constant 0 : index
    %c0_7 = arith.constant 0 : index
    %8 = vector.load %arg7[%c0_6, %c0_7] : memref<16x96xf32, #tpu.memory_space<vmem>>, vector<16x96xf32>
    tpu.vector_store %arg7[%c0_6, %c0_7], %7 {strides = array<i32>} : memref<16x96xf32, #tpu.memory_space<vmem>>, vector<16x96xf32>,
    %c0_i32_8 = arith.constant 0 : i32
    %9 = arith.cmpi eq, %arg2, %c0_i32_8 : i32
    %10 = arith.extui %9 : i1 to i32
    %c0_i32_9 = arith.constant 0 : i32
    %11 = arith.cmpi ne, %10, %c0_i32_9 : i32
    scf.if %11 {
      %c0_10 = arith.constant 0 : index
      %c0_11 = arith.constant 0 : index
      %12 = vector.load %arg7[%c0_10, %c0_11] : memref<16x96xf32, #tpu.memory_space<vmem>>, vector<16x96xf32>
      %c0_12 = arith.constant 0 : index
      %c0_13 = arith.constant 0 : index
      %13 = vector.load %arg5[%c0_12, %c0_13] : memref<1x96xf32, #tpu.memory_space<vmem>>, vector<1x96xf32>
      %14 = vector.broadcast %13 : vector<1x96xf32> to vector<16x96xf32>
      %15 = arith.addf %12, %14 : vector<16x96xf32>
      %c0_14 = arith.constant 0 : index
      %c0_15 = arith.constant 0 : index
      %16 = vector.load %arg6[%c0_14, %c0_15] : memref<16x96xf32, #tpu.memory_space<vmem>>, vector<16x96xf32>
      tpu.vector_store %arg6[%c0_14, %c0_15], %15 {strides = array<i32>} : memref<16x96xf32, #tpu.memory_space<vmem>>, vector<16x96xf32>,
    } else {
    }
    return
  }
  func.func @transform_0(%arg0: i32, %arg1: i32, %arg2: i32) -> (i32, i32) {
    %c0_i32 = arith.constant 0 : i32
    return %arg0, %arg2 : i32, i32
  }
  func.func @transform_1(%arg0: i32, %arg1: i32, %arg2: i32) -> (i32, i32) {
    %c0_i32 = arith.constant 0 : i32
    return %arg2, %arg1 : i32, i32
  }
  func.func @transform_2(%arg0: i32, %arg1: i32, %arg2: i32) -> (i32, i32) {
    %c0_i32 = arith.constant 0 : i32
    %c0_i32_0 = arith.constant 0 : i32
    return %c0_i32, %arg1 : i32, i32
  }
  func.func @transform_3(%arg0: i32, %arg1: i32, %arg2: i32) -> (i32, i32) {
    %c0_i32 = arith.constant 0 : i32
    return %arg0, %arg1 : i32, i32
  }
}

module attributes {stable_mosaic.version = 11 : i64} {
  func.func @_attn_kernel(%arg0: i32, %arg1: memref<1x8x96xf32, #tpu.memory_space<vmem>>, %arg2: memref<1x8x32xf32, #tpu.memory_space<vmem>>) attributes {dimension_semantics = [#tpu.dimension_semantics<parallel>], iteration_bounds = array<i64: 2>, scalar_prefetch = 0 : i64, scratch_operands = 0 : i64, tpu.core_type = #tpu.core_type<tc>, window_params = [{transform_indices = @transform_0, window_bounds = array<i64: 1, 8, 96>}, {transform_indices = @transform_1, window_bounds = array<i64: 1, 8, 32>}]} {
    %c0 = arith.constant 0 : index
    %c0_0 = arith.constant 0 : index
    %c0_1 = arith.constant 0 : index
    %0 = vector.load %arg1[%c0, %c0_0, %c0_1] : memref<1x8x96xf32, #tpu.memory_space<vmem>>, vector<1x8x96xf32>
    %1 = vector.shape_cast %0 : vector<1x8x96xf32> to vector<8x96xf32>
    %2 = vector.extract_strided_slice %1 {offsets = [0, 0], sizes = [8, 16], strides = [1, 1]} : vector<8x96xf32> to vector<8x16xf32>
    %cst = arith.constant 2.500000e-01 : f32
    %3 = vector.broadcast %cst : f32 to vector<8x16xf32>
    %4 = arith.mulf %2, %3 : vector<8x16xf32>
    %5 = vector.extract_strided_slice %1 {offsets = [0, 32], sizes = [8, 16], strides = [1, 1]} : vector<8x96xf32> to vector<8x16xf32>
    %6 = vector.extract_strided_slice %1 {offsets = [0, 64], sizes = [8, 16], strides = [1, 1]} : vector<8x96xf32> to vector<8x16xf32>
    %cst_2 = arith.constant dense<0.000000e+00> : vector<8x8xf32>
    %7 = tpu.matmul %4, %5, %cst_2 {dimension_numbers = #tpu.dot_dimension_numbers<[1], [1], [0], [0], [0, 0, 1, 0], [], []>} : vector<8x16xf32>, vector<8x16xf32>, vector<8x8xf32> -> vector<8x8xf32>
    %cst_3 = arith.constant dense<0xFF800000> : vector<8xf32>
    %8 = vector.multi_reduction <maximumf>, %7, %cst_3 [1] : vector<8x8xf32> to vector<8xf32>
    %9 = vector.shape_cast %8 : vector<8xf32> to vector<8x1xf32>
    %10 = vector.broadcast %9 : vector<8x1xf32> to vector<8x8xf32>
    %11 = arith.subf %7, %10 : vector<8x8xf32>
    %12 = math.exp %11 : vector<8x8xf32>
    %cst_4 = arith.constant dense<0.000000e+00> : vector<8xf32>
    %13 = vector.multi_reduction <add>, %12, %cst_4 [1] : vector<8x8xf32> to vector<8xf32>
    %14 = vector.shape_cast %13 : vector<8xf32> to vector<8x1xf32>
    %15 = tpu.reciprocal %14 {approx = true} : vector<8x1xf32> -> vector<8x1xf32>
    %16 = vector.broadcast %15 : vector<8x1xf32> to vector<8x8xf32>
    %17 = arith.mulf %12, %16 : vector<8x8xf32>
    %cst_5 = arith.constant dense<0.000000e+00> : vector<8x16xf32>
    %18 = tpu.matmul %17, %6, %cst_5 {dimension_numbers = #tpu.dot_dimension_numbers<[1], [0], [0], [1], [0, 0, 1, 1], [], []>} : vector<8x8xf32>, vector<8x16xf32>, vector<8x16xf32> -> vector<8x16xf32>
    %c0_6 = arith.constant 0 : index
    %c0_7 = arith.constant 0 : index
    %c0_8 = arith.constant 0 : index
    %19 = vector.load %arg2[%c0_6, %c0_7, %c0_8] : memref<1x8x32xf32, #tpu.memory_space<vmem>>, vector<1x8x16xf32>
    %20 = vector.shape_cast %19 : vector<1x8x16xf32> to vector<8x16xf32>
    %21 = vector.shape_cast %18 : vector<8x16xf32> to vector<1x8x16xf32>
    tpu.vector_store %arg2[%c0_6, %c0_7, %c0_8], %21 {strides = array<i32>} : memref<1x8x32xf32, #tpu.memory_space<vmem>>, vector<1x8x16xf32>,
    %22 = vector.extract_strided_slice %1 {offsets = [0, 16], sizes = [8, 16], strides = [1, 1]} : vector<8x96xf32> to vector<8x16xf32>
    %cst_9 = arith.constant 2.500000e-01 : f32
    %23 = vector.broadcast %cst_9 : f32 to vector<8x16xf32>
    %24 = arith.mulf %22, %23 : vector<8x16xf32>
    %25 = vector.extract_strided_slice %1 {offsets = [0, 48], sizes = [8, 16], strides = [1, 1]} : vector<8x96xf32> to vector<8x16xf32>
    %26 = vector.extract_strided_slice %1 {offsets = [0, 80], sizes = [8, 16], strides = [1, 1]} : vector<8x96xf32> to vector<8x16xf32>
    %cst_10 = arith.constant dense<0.000000e+00> : vector<8x8xf32>
    %27 = tpu.matmul %24, %25, %cst_10 {dimension_numbers = #tpu.dot_dimension_numbers<[1], [1], [0], [0], [0, 0, 1, 0], [], []>} : vector<8x16xf32>, vector<8x16xf32>, vector<8x8xf32> -> vector<8x8xf32>
    %cst_11 = arith.constant dense<0xFF800000> : vector<8xf32>
    %28 = vector.multi_reduction <maximumf>, %27, %cst_11 [1] : vector<8x8xf32> to vector<8xf32>
    %29 = vector.shape_cast %28 : vector<8xf32> to vector<8x1xf32>
    %30 = vector.broadcast %29 : vector<8x1xf32> to vector<8x8xf32>
    %31 = arith.subf %27, %30 : vector<8x8xf32>
    %32 = math.exp %31 : vector<8x8xf32>
    %cst_12 = arith.constant dense<0.000000e+00> : vector<8xf32>
    %33 = vector.multi_reduction <add>, %32, %cst_12 [1] : vector<8x8xf32> to vector<8xf32>
    %34 = vector.shape_cast %33 : vector<8xf32> to vector<8x1xf32>
    %35 = tpu.reciprocal %34 {approx = true} : vector<8x1xf32> -> vector<8x1xf32>
    %36 = vector.broadcast %35 : vector<8x1xf32> to vector<8x8xf32>
    %37 = arith.mulf %32, %36 : vector<8x8xf32>
    %cst_13 = arith.constant dense<0.000000e+00> : vector<8x16xf32>
    %38 = tpu.matmul %37, %26, %cst_13 {dimension_numbers = #tpu.dot_dimension_numbers<[1], [0], [0], [1], [0, 0, 1, 1], [], []>} : vector<8x8xf32>, vector<8x16xf32>, vector<8x16xf32> -> vector<8x16xf32>
    %c0_14 = arith.constant 0 : index
    %c0_15 = arith.constant 0 : index
    %c16 = arith.constant 16 : index
    %39 = vector.load %arg2[%c0_14, %c0_15, %c16] : memref<1x8x32xf32, #tpu.memory_space<vmem>>, vector<1x8x16xf32>
    %40 = vector.shape_cast %39 : vector<1x8x16xf32> to vector<8x16xf32>
    %41 = vector.shape_cast %38 : vector<8x16xf32> to vector<1x8x16xf32>
    tpu.vector_store %arg2[%c0_14, %c0_15, %c16], %41 {strides = array<i32>} : memref<1x8x32xf32, #tpu.memory_space<vmem>>, vector<1x8x16xf32>,
    return
  }
  func.func @transform_0(%arg0: i32) -> (i32, i32, i32) {
    %c0_i32 = arith.constant 0 : i32
    %c0_i32_0 = arith.constant 0 : i32
    %c0_i32_1 = arith.constant 0 : i32
    return %arg0, %c0_i32, %c0_i32_0 : i32, i32, i32
  }
  func.func @transform_1(%arg0: i32) -> (i32, i32, i32) {
    %c0_i32 = arith.constant 0 : i32
    %c0_i32_0 = arith.constant 0 : i32
    %c0_i32_1 = arith.constant 0 : i32
    return %arg0, %c0_i32, %c0_i32_0 : i32, i32, i32
  }
}

module attributes {stable_mosaic.version = 11 : i64} {
  func.func @_mm_res_ln_kernel(%arg0: i32, %arg1: memref<16x32xf32, #tpu.memory_space<vmem>>, %arg2: memref<32x32xf32, #tpu.memory_space<vmem>>, %arg3: memref<1x32xf32, #tpu.memory_space<vmem>>, %arg4: memref<16x32xf32, #tpu.memory_space<vmem>>, %arg5: memref<1x32xf32, #tpu.memory_space<vmem>>, %arg6: memref<1x32xf32, #tpu.memory_space<vmem>>, %arg7: memref<16x32xf32, #tpu.memory_space<vmem>>) attributes {dimension_semantics = [#tpu.dimension_semantics<parallel>], iteration_bounds = array<i64: 1>, scalar_prefetch = 0 : i64, scratch_operands = 0 : i64, tpu.core_type = #tpu.core_type<tc>, window_params = [{transform_indices = @transform_0, window_bounds = array<i64: 16, 32>}, {pipeline_mode = #tpu.pipeline_mode<synchronous>, transform_indices = @transform_1, window_bounds = array<i64: 32, 32>}, {pipeline_mode = #tpu.pipeline_mode<synchronous>, transform_indices = @transform_2, window_bounds = array<i64: 1, 32>}, {transform_indices = @transform_3, window_bounds = array<i64: 16, 32>}, {pipeline_mode = #tpu.pipeline_mode<synchronous>, transform_indices = @transform_4, window_bounds = array<i64: 1, 32>}, {pipeline_mode = #tpu.pipeline_mode<synchronous>, transform_indices = @transform_5, window_bounds = array<i64: 1, 32>}, {transform_indices = @transform_6, window_bounds = array<i64: 16, 32>}]} {
    %c0 = arith.constant 0 : index
    %c0_0 = arith.constant 0 : index
    %0 = vector.load %arg1[%c0, %c0_0] : memref<16x32xf32, #tpu.memory_space<vmem>>, vector<16x32xf32>
    %c0_1 = arith.constant 0 : index
    %c0_2 = arith.constant 0 : index
    %1 = vector.load %arg2[%c0_1, %c0_2] : memref<32x32xf32, #tpu.memory_space<vmem>>, vector<32x32xf32>
    %cst = arith.constant dense<0.000000e+00> : vector<16x32xf32>
    %2 = tpu.matmul %0, %1, %cst {dimension_numbers = #tpu.dot_dimension_numbers<[1], [0], [0], [1], [0, 0, 1, 1], [], []>} : vector<16x32xf32>, vector<32x32xf32>, vector<16x32xf32> -> vector<16x32xf32>
    %c0_3 = arith.constant 0 : index
    %c0_4 = arith.constant 0 : index
    %3 = vector.load %arg3[%c0_3, %c0_4] : memref<1x32xf32, #tpu.memory_space<vmem>>, vector<1x32xf32>
    %4 = vector.broadcast %3 : vector<1x32xf32> to vector<16x32xf32>
    %5 = arith.addf %2, %4 : vector<16x32xf32>
    %c0_5 = arith.constant 0 : index
    %c0_6 = arith.constant 0 : index
    %6 = vector.load %arg4[%c0_5, %c0_6] : memref<16x32xf32, #tpu.memory_space<vmem>>, vector<16x32xf32>
    %7 = arith.addf %5, %6 : vector<16x32xf32>
    %cst_7 = arith.constant dense<0.000000e+00> : vector<16xf32>
    %8 = vector.multi_reduction <add>, %7, %cst_7 [1] : vector<16x32xf32> to vector<16xf32>
    %9 = vector.shape_cast %8 : vector<16xf32> to vector<16x1xf32>
    %cst_8 = arith.constant 3.200000e+01 : f32
    %10 = vector.broadcast %cst_8 : f32 to vector<16x1xf32>
    %11 = arith.divf %9, %10 : vector<16x1xf32>
    %12 = vector.broadcast %11 : vector<16x1xf32> to vector<16x32xf32>
    %13 = arith.subf %7, %12 : vector<16x32xf32>
    %14 = arith.mulf %13, %13 : vector<16x32xf32>
    %cst_9 = arith.constant dense<0.000000e+00> : vector<16xf32>
    %15 = vector.multi_reduction <add>, %14, %cst_9 [1] : vector<16x32xf32> to vector<16xf32>
    %16 = vector.shape_cast %15 : vector<16xf32> to vector<16x1xf32>
    %cst_10 = arith.constant 3.200000e+01 : f32
    %17 = vector.broadcast %cst_10 : f32 to vector<16x1xf32>
    %18 = arith.divf %16, %17 : vector<16x1xf32>
    %19 = vector.broadcast %11 : vector<16x1xf32> to vector<16x32xf32>
    %20 = arith.subf %7, %19 : vector<16x32xf32>
    %cst_11 = arith.constant 9.99999974E-6 : f32
    %21 = vector.broadcast %cst_11 : f32 to vector<16x1xf32>
    %22 = arith.addf %18, %21 : vector<16x1xf32>
    %23 = math.rsqrt %22 : vector<16x1xf32>
    %24 = vector.broadcast %23 : vector<16x1xf32> to vector<16x32xf32>
    %25 = arith.mulf %20, %24 : vector<16x32xf32>
    %c0_12 = arith.constant 0 : index
    %c0_13 = arith.constant 0 : index
    %26 = vector.load %arg5[%c0_12, %c0_13] : memref<1x32xf32, #tpu.memory_space<vmem>>, vector<1x32xf32>
    %27 = vector.broadcast %26 : vector<1x32xf32> to vector<16x32xf32>
    %28 = arith.mulf %25, %27 : vector<16x32xf32>
    %c0_14 = arith.constant 0 : index
    %c0_15 = arith.constant 0 : index
    %29 = vector.load %arg6[%c0_14, %c0_15] : memref<1x32xf32, #tpu.memory_space<vmem>>, vector<1x32xf32>
    %30 = vector.broadcast %29 : vector<1x32xf32> to vector<16x32xf32>
    %31 = arith.addf %28, %30 : vector<16x32xf32>
    %c0_16 = arith.constant 0 : index
    %c0_17 = arith.constant 0 : index
    %32 = vector.load %arg7[%c0_16, %c0_17] : memref<16x32xf32, #tpu.memory_space<vmem>>, vector<16x32xf32>
    tpu.vector_store %arg7[%c0_16, %c0_17], %31 {strides = array<i32>} : memref<16x32xf32, #tpu.memory_space<vmem>>, vector<16x32xf32>,
    return
  }
  func.func @transform_0(%arg0: i32) -> (i32, i32) {
    %c0_i32 = arith.constant 0 : i32
    %c0_i32_0 = arith.constant 0 : i32
    return %arg0, %c0_i32 : i32, i32
  }
  func.func @transform_1(%arg0: i32) -> (i32, i32) {
    %c0_i32 = arith.constant 0 : i32
    %c0_i32_0 = arith.constant 0 : i32
    %c0_i32_1 = arith.constant 0 : i32
    return %c0_i32, %c0_i32_0 : i32, i32
  }
  func.func @transform_2(%arg0: i32) -> (i32, i32) {
    %c0_i32 = arith.constant 0 : i32
    %c0_i32_0 = arith.constant 0 : i32
    %c0_i32_1 = arith.constant 0 : i32
    return %c0_i32, %c0_i32_0 : i32, i32
  }
  func.func @transform_3(%arg0: i32) -> (i32, i32) {
    %c0_i32 = arith.constant 0 : i32
    %c0_i32_0 = arith.constant 0 : i32
    return %arg0, %c0_i32 : i32, i32
  }
  func.func @transform_4(%arg0: i32) -> (i32, i32) {
    %c0_i32 = arith.constant 0 : i32
    %c0_i32_0 = arith.constant 0 : i32
    %c0_i32_1 = arith.constant 0 : i32
    return %c0_i32, %c0_i32_0 : i32, i32
  }
  func.func @transform_5(%arg0: i32) -> (i32, i32) {
    %c0_i32 = arith.constant 0 : i32
    %c0_i32_0 = arith.constant 0 : i32
    %c0_i32_1 = arith.constant 0 : i32
    return %c0_i32, %c0_i32_0 : i32, i32
  }
  func.func @transform_6(%arg0: i32) -> (i32, i32) {
    %c0_i32 = arith.constant 0 : i32
    %c0_i32_0 = arith.constant 0 : i32
    return %arg0, %c0_i32 : i32, i32
  }
}

module attributes {stable_mosaic.version = 11 : i64} {
  func.func @_conv_block_kernel(%arg0: i32, %arg1: memref<1x10x32xf32, #tpu.memory_space<vmem>>, %arg2: memref<3x32x64xf32, #tpu.memory_space<vmem>>, %arg3: memref<1x64xf32, #tpu.memory_space<vmem>>, %arg4: memref<1x8x64xf32, #tpu.memory_space<vmem>>) attributes {dimension_semantics = [#tpu.dimension_semantics<parallel>], iteration_bounds = array<i64: 2>, scalar_prefetch = 0 : i64, scratch_operands = 0 : i64, tpu.core_type = #tpu.core_type<tc>, window_params = [{transform_indices = @transform_0, window_bounds = array<i64: 1, 10, 32>}, {pipeline_mode = #tpu.pipeline_mode<synchronous>, transform_indices = @transform_1, window_bounds = array<i64: 3, 32, 64>}, {pipeline_mode = #tpu.pipeline_mode<synchronous>, transform_indices = @transform_2, window_bounds = array<i64: 1, 64>}, {transform_indices = @transform_3, window_bounds = array<i64: 1, 8, 64>}]} {
    %c0 = arith.constant 0 : index
    %c0_0 = arith.constant 0 : index
    %c0_1 = arith.constant 0 : index
    %0 = vector.load %arg1[%c0, %c0_0, %c0_1] : memref<1x10x32xf32, #tpu.memory_space<vmem>>, vector<1x10x32xf32>
    %1 = vector.shape_cast %0 : vector<1x10x32xf32> to vector<10x32xf32>
    %cst = arith.constant 0.000000e+00 : f32
    %2 = vector.broadcast %cst : f32 to vector<8x64xf32>
    %3 = vector.extract_strided_slice %1 {offsets = [0, 0], sizes = [8, 32], strides = [1, 1]} : vector<10x32xf32> to vector<8x32xf32>
    %c0_2 = arith.constant 0 : index
    %c0_3 = arith.constant 0 : index
    %c0_4 = arith.constant 0 : index
    %4 = vector.load %arg2[%c0_2, %c0_3, %c0_4] : memref<3x32x64xf32, #tpu.memory_space<vmem>>, vector<1x32x64xf32>
    %5 = vector.shape_cast %4 : vector<1x32x64xf32> to vector<32x64xf32>
    %cst_5 = arith.constant dense<0.000000e+00> : vector<8x64xf32>
    %6 = tpu.matmul %3, %5, %cst_5 {dimension_numbers = #tpu.dot_dimension_numbers<[1], [0], [0], [1], [0, 0, 1, 1], [], []>} : vector<8x32xf32>, vector<32x64xf32>, vector<8x64xf32> -> vector<8x64xf32>
    %7 = arith.addf %2, %6 : vector<8x64xf32>
    %8 = vector.extract_strided_slice %1 {offsets = [1, 0], sizes = [8, 32], strides = [1, 1]} : vector<10x32xf32> to vector<8x32xf32>
    %c1 = arith.constant 1 : index
    %c0_6 = arith.constant 0 : index
    %c0_7 = arith.constant 0 : index
    %9 = vector.load %arg2[%c1, %c0_6, %c0_7] : memref<3x32x64xf32, #tpu.memory_space<vmem>>, vector<1x32x64xf32>
    %10 = vector.shape_cast %9 : vector<1x32x64xf32> to vector<32x64xf32>
    %cst_8 = arith.constant dense<0.000000e+00> : vector<8x64xf32>
    %11 = tpu.matmul %8, %10, %cst_8 {dimension_numbers = #tpu.dot_dimension_numbers<[1], [0], [0], [1], [0, 0, 1, 1], [], []>} : vector<8x32xf32>, vector<32x64xf32>, vector<8x64xf32> -> vector<8x64xf32>
    %12 = arith.addf %7, %11 : vector<8x64xf32>
    %13 = vector.extract_strided_slice %1 {offsets = [2, 0], sizes = [8, 32], strides = [1, 1]} : vector<10x32xf32> to vector<8x32xf32>
    %c2 = arith.constant 2 : index
    %c0_9 = arith.constant 0 : index
    %c0_10 = arith.constant 0 : index
    %14 = vector.load %arg2[%c2, %c0_9, %c0_10] : memref<3x32x64xf32, #tpu.memory_space<vmem>>, vector<1x32x64xf32>
    %15 = vector.shape_cast %14 : vector<1x32x64xf32> to vector<32x64xf32>
    %cst_11 = arith.constant dense<0.000000e+00> : vector<8x64xf32>
    %16 = tpu.matmul %13, %15, %cst_11 {dimension_numbers = #tpu.dot_dimension_numbers<[1], [0], [0], [1], [0, 0, 1, 1], [], []>} : vector<8x32xf32>, vector<32x64xf32>, vector<8x64xf32> -> vector<8x64xf32>
    %17 = arith.addf %12, %16 : vector<8x64xf32>
    %c0_12 = arith.constant 0 : index
    %c0_13 = arith.constant 0 : index
    %18 = vector.load %arg3[%c0_12, %c0_13] : memref<1x64xf32, #tpu.memory_space<vmem>>, vector<1x64xf32>
    %19 = vector.broadcast %18 : vector<1x64xf32> to vector<8x64xf32>
    %20 = arith.addf %17, %19 : vector<8x64xf32>
    %cst_14 = arith.constant 0.000000e+00 : f32
    %21 = vector.broadcast %cst_14 : f32 to vector<8x64xf32>
    %22 = arith.maximumf %20, %21 : vector<8x64xf32>
    %c0_15 = arith.constant 0 : index
    %c0_16 = arith.constant 0 : index
    %c0_17 = arith.constant 0 : index
    %23 = vector.load %arg4[%c0_15, %c0_16, %c0_17] : memref<1x8x64xf32, #tpu.memory_space<vmem>>, vector<1x8x64xf32>
    %24 = vector.shape_cast %23 : vector<1x8x64xf32> to vector<8x64xf32>
    %25 = vector.shape_cast %22 : vector<8x64xf32> to vector<1x8x64xf32>
    tpu.vector_store %arg4[%c0_15, %c0_16, %c0_17], %25 {strides = array<i32>} : memref<1x8x64xf32, #tpu.memory_space<vmem>>, vector<1x8x64xf32>,
    return
  }
  func.func @transform_0(%arg0: i32) -> (i32, i32, i32) {
    %c0_i32 = arith.constant 0 : i32
    %c0_i32_0 = arith.constant 0 : i32
    %c0_i32_1 = arith.constant 0 : i32
    return %arg0, %c0_i32, %c0_i32_0 : i32, i32, i32
  }
  func.func @transform_1(%arg0: i32) -> (i32, i32, i32) {
    %c0_i32 = arith.constant 0 : i32
    %c0_i32_0 = arith.constant 0 : i32
    %c0_i32_1 = arith.constant 0 : i32
    %c0_i32_2 = arith.constant 0 : i32
    return %c0_i32, %c0_i32_0, %c0_i32_1 : i32, i32, i32
  }
  func.func @transform_2(%arg0: i32) -> (i32, i32) {
    %c0_i32 = arith.constant 0 : i32
    %c0_i32_0 = arith.constant 0 : i32
    %c0_i32_1 = arith.constant 0 : i32
    return %c0_i32, %c0_i32_0 : i32, i32
  }
  func.func @transform_3(%arg0: i32) -> (i32, i32, i32) {
    %c0_i32 = arith.constant 0 : i32
    %c0_i32_0 = arith.constant 0 : i32
    %c0_i32_1 = arith.constant 0 : i32
    return %arg0, %c0_i32, %c0_i32_0 : i32, i32, i32
  }
}

module attributes {stable_mosaic.version = 11 : i64} {
  func.func @_conv_res_ln_kernel(%arg0: i32, %arg1: memref<1x10x64xf32, #tpu.memory_space<vmem>>, %arg2: memref<3x64x32xf32, #tpu.memory_space<vmem>>, %arg3: memref<1x32xf32, #tpu.memory_space<vmem>>, %arg4: memref<1x8x32xf32, #tpu.memory_space<vmem>>, %arg5: memref<1x32xf32, #tpu.memory_space<vmem>>, %arg6: memref<1x32xf32, #tpu.memory_space<vmem>>, %arg7: memref<1x8x32xf32, #tpu.memory_space<vmem>>) attributes {dimension_semantics = [#tpu.dimension_semantics<parallel>], iteration_bounds = array<i64: 2>, scalar_prefetch = 0 : i64, scratch_operands = 0 : i64, tpu.core_type = #tpu.core_type<tc>, window_params = [{transform_indices = @transform_0, window_bounds = array<i64: 1, 10, 64>}, {pipeline_mode = #tpu.pipeline_mode<synchronous>, transform_indices = @transform_1, window_bounds = array<i64: 3, 64, 32>}, {pipeline_mode = #tpu.pipeline_mode<synchronous>, transform_indices = @transform_2, window_bounds = array<i64: 1, 32>}, {transform_indices = @transform_3, window_bounds = array<i64: 1, 8, 32>}, {pipeline_mode = #tpu.pipeline_mode<synchronous>, transform_indices = @transform_4, window_bounds = array<i64: 1, 32>}, {pipeline_mode = #tpu.pipeline_mode<synchronous>, transform_indices = @transform_5, window_bounds = array<i64: 1, 32>}, {transform_indices = @transform_6, window_bounds = array<i64: 1, 8, 32>}]} {
    %c0 = arith.constant 0 : index
    %c0_0 = arith.constant 0 : index
    %c0_1 = arith.constant 0 : index
    %0 = vector.load %arg1[%c0, %c0_0, %c0_1] : memref<1x10x64xf32, #tpu.memory_space<vmem>>, vector<1x10x64xf32>
    %1 = vector.shape_cast %0 : vector<1x10x64xf32> to vector<10x64xf32>
    %cst = arith.constant 0.000000e+00 : f32
    %2 = vector.broadcast %cst : f32 to vector<8x32xf32>
    %3 = vector.extract_strided_slice %1 {offsets = [0, 0], sizes = [8, 64], strides = [1, 1]} : vector<10x64xf32> to vector<8x64xf32>
    %c0_2 = arith.constant 0 : index
    %c0_3 = arith.constant 0 : index
    %c0_4 = arith.constant 0 : index
    %4 = vector.load %arg2[%c0_2, %c0_3, %c0_4] : memref<3x64x32xf32, #tpu.memory_space<vmem>>, vector<1x64x32xf32>
    %5 = vector.shape_cast %4 : vector<1x64x32xf32> to vector<64x32xf32>
    %cst_5 = arith.constant dense<0.000000e+00> : vector<8x32xf32>
    %6 = tpu.matmul %3, %5, %cst_5 {dimension_numbers = #tpu.dot_dimension_numbers<[1], [0], [0], [1], [0, 0, 1, 1], [], []>} : vector<8x64xf32>, vector<64x32xf32>, vector<8x32xf32> -> vector<8x32xf32>
    %7 = arith.addf %2, %6 : vector<8x32xf32>
    %8 = vector.extract_strided_slice %1 {offsets = [1, 0], sizes = [8, 64], strides = [1, 1]} : vector<10x64xf32> to vector<8x64xf32>
    %c1 = arith.constant 1 : index
    %c0_6 = arith.constant 0 : index
    %c0_7 = arith.constant 0 : index
    %9 = vector.load %arg2[%c1, %c0_6, %c0_7] : memref<3x64x32xf32, #tpu.memory_space<vmem>>, vector<1x64x32xf32>
    %10 = vector.shape_cast %9 : vector<1x64x32xf32> to vector<64x32xf32>
    %cst_8 = arith.constant dense<0.000000e+00> : vector<8x32xf32>
    %11 = tpu.matmul %8, %10, %cst_8 {dimension_numbers = #tpu.dot_dimension_numbers<[1], [0], [0], [1], [0, 0, 1, 1], [], []>} : vector<8x64xf32>, vector<64x32xf32>, vector<8x32xf32> -> vector<8x32xf32>
    %12 = arith.addf %7, %11 : vector<8x32xf32>
    %13 = vector.extract_strided_slice %1 {offsets = [2, 0], sizes = [8, 64], strides = [1, 1]} : vector<10x64xf32> to vector<8x64xf32>
    %c2 = arith.constant 2 : index
    %c0_9 = arith.constant 0 : index
    %c0_10 = arith.constant 0 : index
    %14 = vector.load %arg2[%c2, %c0_9, %c0_10] : memref<3x64x32xf32, #tpu.memory_space<vmem>>, vector<1x64x32xf32>
    %15 = vector.shape_cast %14 : vector<1x64x32xf32> to vector<64x32xf32>
    %cst_11 = arith.constant dense<0.000000e+00> : vector<8x32xf32>
    %16 = tpu.matmul %13, %15, %cst_11 {dimension_numbers = #tpu.dot_dimension_numbers<[1], [0], [0], [1], [0, 0, 1, 1], [], []>} : vector<8x64xf32>, vector<64x32xf32>, vector<8x32xf32> -> vector<8x32xf32>
    %17 = arith.addf %12, %16 : vector<8x32xf32>
    %c0_12 = arith.constant 0 : index
    %c0_13 = arith.constant 0 : index
    %18 = vector.load %arg3[%c0_12, %c0_13] : memref<1x32xf32, #tpu.memory_space<vmem>>, vector<1x32xf32>
    %19 = vector.broadcast %18 : vector<1x32xf32> to vector<8x32xf32>
    %20 = arith.addf %17, %19 : vector<8x32xf32>
    %c0_14 = arith.constant 0 : index
    %c0_15 = arith.constant 0 : index
    %c0_16 = arith.constant 0 : index
    %21 = vector.load %arg4[%c0_14, %c0_15, %c0_16] : memref<1x8x32xf32, #tpu.memory_space<vmem>>, vector<1x8x32xf32>
    %22 = vector.shape_cast %21 : vector<1x8x32xf32> to vector<8x32xf32>
    %23 = arith.addf %20, %22 : vector<8x32xf32>
    %cst_17 = arith.constant dense<0.000000e+00> : vector<8xf32>
    %24 = vector.multi_reduction <add>, %23, %cst_17 [1] : vector<8x32xf32> to vector<8xf32>
    %25 = vector.shape_cast %24 : vector<8xf32> to vector<8x1xf32>
    %cst_18 = arith.constant 3.200000e+01 : f32
    %26 = vector.broadcast %cst_18 : f32 to vector<8x1xf32>
    %27 = arith.divf %25, %26 : vector<8x1xf32>
    %28 = vector.broadcast %27 : vector<8x1xf32> to vector<8x32xf32>
    %29 = arith.subf %23, %28 : vector<8x32xf32>
    %30 = arith.mulf %29, %29 : vector<8x32xf32>
    %cst_19 = arith.constant dense<0.000000e+00> : vector<8xf32>
    %31 = vector.multi_reduction <add>, %30, %cst_19 [1] : vector<8x32xf32> to vector<8xf32>
    %32 = vector.shape_cast %31 : vector<8xf32> to vector<8x1xf32>
    %cst_20 = arith.constant 3.200000e+01 : f32
    %33 = vector.broadcast %cst_20 : f32 to vector<8x1xf32>
    %34 = arith.divf %32, %33 : vector<8x1xf32>
    %35 = vector.broadcast %27 : vector<8x1xf32> to vector<8x32xf32>
    %36 = arith.subf %23, %35 : vector<8x32xf32>
    %cst_21 = arith.constant 9.99999974E-6 : f32
    %37 = vector.broadcast %cst_21 : f32 to vector<8x1xf32>
    %38 = arith.addf %34, %37 : vector<8x1xf32>
    %39 = math.rsqrt %38 : vector<8x1xf32>
    %40 = vector.broadcast %39 : vector<8x1xf32> to vector<8x32xf32>
    %41 = arith.mulf %36, %40 : vector<8x32xf32>
    %c0_22 = arith.constant 0 : index
    %c0_23 = arith.constant 0 : index
    %42 = vector.load %arg5[%c0_22, %c0_23] : memref<1x32xf32, #tpu.memory_space<vmem>>, vector<1x32xf32>
    %43 = vector.broadcast %42 : vector<1x32xf32> to vector<8x32xf32>
    %44 = arith.mulf %41, %43 : vector<8x32xf32>
    %c0_24 = arith.constant 0 : index
    %c0_25 = arith.constant 0 : index
    %45 = vector.load %arg6[%c0_24, %c0_25] : memref<1x32xf32, #tpu.memory_space<vmem>>, vector<1x32xf32>
    %46 = vector.broadcast %45 : vector<1x32xf32> to vector<8x32xf32>
    %47 = arith.addf %44, %46 : vector<8x32xf32>
    %c0_26 = arith.constant 0 : index
    %c0_27 = arith.constant 0 : index
    %c0_28 = arith.constant 0 : index
    %48 = vector.load %arg7[%c0_26, %c0_27, %c0_28] : memref<1x8x32xf32, #tpu.memory_space<vmem>>, vector<1x8x32xf32>
    %49 = vector.shape_cast %48 : vector<1x8x32xf32> to vector<8x32xf32>
    %50 = vector.shape_cast %47 : vector<8x32xf32> to vector<1x8x32xf32>
    tpu.vector_store %arg7[%c0_26, %c0_27, %c0_28], %50 {strides = array<i32>} : memref<1x8x32xf32, #tpu.memory_space<vmem>>, vector<1x8x32xf32>,
    return
  }
  func.func @transform_0(%arg0: i32) -> (i32, i32, i32) {
    %c0_i32 = arith.constant 0 : i32
    %c0_i32_0 = arith.constant 0 : i32
    %c0_i32_1 = arith.constant 0 : i32
    return %arg0, %c0_i32, %c0_i32_0 : i32, i32, i32
  }
  func.func @transform_1(%arg0: i32) -> (i32, i32, i32) {
    %c0_i32 = arith.constant 0 : i32
    %c0_i32_0 = arith.constant 0 : i32
    %c0_i32_1 = arith.constant 0 : i32
    %c0_i32_2 = arith.constant 0 : i32
    return %c0_i32, %c0_i32_0, %c0_i32_1 : i32, i32, i32
  }
  func.func @transform_2(%arg0: i32) -> (i32, i32) {
    %c0_i32 = arith.constant 0 : i32
    %c0_i32_0 = arith.constant 0 : i32
    %c0_i32_1 = arith.constant 0 : i32
    return %c0_i32, %c0_i32_0 : i32, i32
  }
  func.func @transform_3(%arg0: i32) -> (i32, i32, i32) {
    %c0_i32 = arith.constant 0 : i32
    %c0_i32_0 = arith.constant 0 : i32
    %c0_i32_1 = arith.constant 0 : i32
    return %arg0, %c0_i32, %c0_i32_0 : i32, i32, i32
  }
  func.func @transform_4(%arg0: i32) -> (i32, i32) {
    %c0_i32 = arith.constant 0 : i32
    %c0_i32_0 = arith.constant 0 : i32
    %c0_i32_1 = arith.constant 0 : i32
    return %c0_i32, %c0_i32_0 : i32, i32
  }
  func.func @transform_5(%arg0: i32) -> (i32, i32) {
    %c0_i32 = arith.constant 0 : i32
    %c0_i32_0 = arith.constant 0 : i32
    %c0_i32_1 = arith.constant 0 : i32
    return %c0_i32, %c0_i32_0 : i32, i32
  }
  func.func @transform_6(%arg0: i32) -> (i32, i32, i32) {
    %c0_i32 = arith.constant 0 : i32
    %c0_i32_0 = arith.constant 0 : i32
    %c0_i32_1 = arith.constant 0 : i32
    return %arg0, %c0_i32, %c0_i32_0 : i32, i32, i32
  }
}

module attributes {stable_mosaic.version = 11 : i64} {
  func.func @_mm_bias_kernel(%arg0: i32, %arg1: i32, %arg2: i32, %arg3: memref<16x32xf32, #tpu.memory_space<vmem>>, %arg4: memref<32x8xf32, #tpu.memory_space<vmem>>, %arg5: memref<1x8xf32, #tpu.memory_space<vmem>>, %arg6: memref<16x8xf32, #tpu.memory_space<vmem>>, %arg7: memref<16x8xf32, #tpu.memory_space<vmem>>) attributes {dimension_semantics = [#tpu.dimension_semantics<parallel>, #tpu.dimension_semantics<parallel>, #tpu.dimension_semantics<arbitrary>], iteration_bounds = array<i64: 1, 1, 1>, scalar_prefetch = 0 : i64, scratch_operands = 1 : i64, tpu.core_type = #tpu.core_type<tc>, window_params = [{transform_indices = @transform_0, window_bounds = array<i64: 16, 32>}, {transform_indices = @transform_1, window_bounds = array<i64: 32, 8>}, {transform_indices = @transform_2, window_bounds = array<i64: 1, 8>}, {transform_indices = @transform_3, window_bounds = array<i64: 16, 8>}]} {
    %c0_i32 = arith.constant 0 : i32
    %0 = arith.cmpi eq, %arg2, %c0_i32 : i32
    %1 = arith.extui %0 : i1 to i32
    %c0_i32_0 = arith.constant 0 : i32
    %2 = arith.cmpi ne, %1, %c0_i32_0 : i32
    scf.if %2 {
      %cst_10 = arith.constant 0.000000e+00 : f32
      %12 = vector.broadcast %cst_10 : f32 to vector<16x8xf32>
      %c0_11 = arith.constant 0 : index
      %c0_12 = arith.constant 0 : index
      %13 = vector.load %arg7[%c0_11, %c0_12] : memref<16x8xf32, #tpu.memory_space<vmem>>, vector<16x8xf32>
      tpu.vector_store %arg7[%c0_11, %c0_12], %12 {strides = array<i32>} : memref<16x8xf32, #tpu.memory_space<vmem>>, vector<16x8xf32>,
    } else {
    }
    %c0 = arith.constant 0 : index
    %c0_1 = arith.constant 0 : index
    %3 = vector.load %arg7[%c0, %c0_1] : memref<16x8xf32, #tpu.memory_space<vmem>>, vector<16x8xf32>
    %c0_2 = arith.constant 0 : index
    %c0_3 = arith.constant 0 : index
    %4 = vector.load %arg3[%c0_2, %c0_3] : memref<16x32xf32, #tpu.memory_space<vmem>>, vector<16x32xf32>
    %c0_4 = arith.constant 0 : index
    %c0_5 = arith.constant 0 : index
    %5 = vector.load %arg4[%c0_4, %c0_5] : memref<32x8xf32, #tpu.memory_space<vmem>>, vector<32x8xf32>
    %cst = arith.constant dense<0.000000e+00> : vector<16x8xf32>
    %6 = tpu.matmul %4, %5, %cst {dimension_numbers = #tpu.dot_dimension_numbers<[1], [0], [0], [1], [0, 0, 1, 1], [], []>} : vector<16x32xf32>, vector<32x8xf32>, vector<16x8xf32> -> vector<16x8xf32>
    %7 = arith.addf %3, %6 : vector<16x8xf32>
    %c0_6 = arith.constant 0 : index
    %c0_7 = arith.constant 0 : index
    %8 = vector.load %arg7[%c0_6, %c0_7] : memref<16x8xf32, #tpu.memory_space<vmem>>, vector<16x8xf32>
    tpu.vector_store %arg7[%c0_6, %c0_7], %7 {strides = array<i32>} : memref<16x8xf32, #tpu.memory_space<vmem>>, vector<16x8xf32>,
    %c0_i32_8 = arith.constant 0 : i32
    %9 = arith.cmpi eq, %arg2, %c0_i32_8 : i32
    %10 = arith.extui %9 : i1 to i32
    %c0_i32_9 = arith.constant 0 : i32
    %11 = arith.cmpi ne, %10, %c0_i32_9 : i32
    scf.if %11 {
      %c0_10 = arith.constant 0 : index
      %c0_11 = arith.constant 0 : index
      %12 = vector.load %arg7[%c0_10, %c0_11] : memref<16x8xf32, #tpu.memory_space<vmem>>, vector<16x8xf32>
      %c0_12 = arith.constant 0 : index
      %c0_13 = arith.constant 0 : index
      %13 = vector.load %arg5[%c0_12, %c0_13] : memref<1x8xf32, #tpu.memory_space<vmem>>, vector<1x8xf32>
      %14 = vector.broadcast %13 : vector<1x8xf32> to vector<16x8xf32>
      %15 = arith.addf %12, %14 : vector<16x8xf32>
      %c0_14 = arith.constant 0 : index
      %c0_15 = arith.constant 0 : index
      %16 = vector.load %arg6[%c0_14, %c0_15] : memref<16x8xf32, #tpu.memory_space<vmem>>, vector<16x8xf32>
      tpu.vector_store %arg6[%c0_14, %c0_15], %15 {strides = array<i32>} : memref<16x8xf32, #tpu.memory_space<vmem>>, vector<16x8xf32>,
    } else {
    }
    return
  }
  func.func @transform_0(%arg0: i32, %arg1: i32, %arg2: i32) -> (i32, i32) {
    %c0_i32 = arith.constant 0 : i32
    return %arg0, %arg2 : i32, i32
  }
  func.func @transform_1(%arg0: i32, %arg1: i32, %arg2: i32) -> (i32, i32) {
    %c0_i32 = arith.constant 0 : i32
    return %arg2, %arg1 : i32, i32
  }
  func.func @transform_2(%arg0: i32, %arg1: i32, %arg2: i32) -> (i32, i32) {
    %c0_i32 = arith.constant 0 : i32
    %c0_i32_0 = arith.constant 0 : i32
    return %c0_i32, %arg1 : i32, i32
  }
  func.func @transform_3(%arg0: i32, %arg1: i32, %arg2: i32) -> (i32, i32) {
    %c0_i32 = arith.constant 0 : i32
    return %arg0, %arg1 : i32, i32
  }
}

</mosaic_0001>

<bundles_post_ra>
// kernel: forward.14
= control target key start
LH: loop header
LB: loop body
LE: loop exit
PB: predicated region body
PF: predicated region fallthrough
CT: control target
= control target key end

     0   :  { %vm33_vm0 = vcmask 1043456   ;;  %vm26_vm1 = vcmask 31744   ;;  %vm18_vm2 = vcmask 261120   ;;  %v150_v3 = vmov 0.0   ;;  %s195_s1 = inlined_call_operand.vmem [shape: f32[4,32], index: 1, kind: input, shape index: {}]   ;;  %s196_s0 = inlined_call_operand.vmem [shape: f32[16,4], index: 0, kind: input, shape index: {}]   ;;  %s197_s2 = inlined_call_operand.vmem [shape: f32[1,32], index: 2, kind: input, shape index: {}]   ;;  %s198_s3 = inlined_call_operand.vmem [shape: f32[16,32], index: 3, kind: output, shape index: {}]  }
   0x1   :  { %v25_v0 = vld [vmem:[%s195_s1] sm:$0xf]  ;;  %v24_v2 = vld [vmem:[%s196_s0 + $0x8] sm:$0xff]  ;;  %20 = vst.msk [vmem:[#allocation2 + $0x8] sm:$0xff] %vm18_vm2, %v150_v3  ;;  %19 = vst.msk [vmem:[#allocation2] sm:$0xff] %vm18_vm2, %v150_v3 }
   0x2   :  { %v23_v1 = vld [vmem:[%s196_s0] sm:$0xff]  ;;  %144 = vmatprep.subr.msk.mxu0 %vm33_vm0, %v25_v0 }
   0x3   :  { %146 = vmatprep.mubr.msk.f32.mxu0 %vm26_vm1, %v23_v1  ;;  %145 = vmatpush3.msk.msra.mxu0 %vm33_vm0, %v25_v0  ;;  %v140_v10 = vld [vmem:[%s197_s2] ss:$0 sm:$0xff] }
   0x4   :  { %147 = vmatmul.mubr.msk.f32.vlgmr.msra.gmra.mrb[0].mxu0 %vm26_vm1, %v24_v2 }
   0x8   :  { %v22_v4 = vld [vmem:[#allocation2 + $0x8] sm:$0xff]  ;;  %v21_v5 = vld [vmem:[#allocation2] sm:$0xff] }
  0xd7   :  { %v148_v6 = vpop.f32.mrb[0].mxu0 }
  0xd8   :  { %v113_v7 = vadd.f32 %v148_v6, %v22_v4  ;;  %v103_v8 = vpop.f32.mrb[1].mxu0 }
  0xd9   :  { %v112_v9 = vadd.f32 %v103_v8, %v21_v5 }
  0xda   :  { %116 = vst.msk [vmem:[#allocation2 + $0x8] sm:$0xff] %vm18_vm2, %v113_v7 }
  0xdb   :  { %115 = vst.msk [vmem:[#allocation2] sm:$0xff] %vm18_vm2, %v112_v9 }
  0xe1   :  { %v121_v11 = vld [vmem:[#allocation2 + $0x8] sm:$0xff] }
  0xe2   :  { %v130_v12 = vadd.f32 %v140_v10, %v121_v11  ;;  %v120_v13 = vld [vmem:[#allocation2] sm:$0xff] }
  0xe3   :  { %v129_v14 = vadd.f32 %v140_v10, %v120_v13 }
  0xe4   :  { %132 = vst.msk [vmem:[%s198_s3 + $0x8] sm:$0xff] %vm18_vm2, %v130_v12 }
  0xe5   :  { %131 = vst.msk [vmem:[%s198_s3] sm:$0xff] %vm18_vm2, %v129_v14 }

// kernel: forward.17
= control target key start
LH: loop header
LB: loop body
LE: loop exit
PB: predicated region body
PF: predicated region fallthrough
CT: control target
= control target key end

     0   :  { %vm29_vm0 = vcmask 261120   ;;  %vm18_vm1 = vcmask 785408   ;;  %v165_v3 = vmov 0.0   ;;  %s221_s1 = inlined_call_operand.vmem [shape: f32[32,96], index: 1, kind: input, shape index: {}]   ;;  %s222_s0 = inlined_call_operand.vmem [shape: f32[16,32], index: 0, kind: input, shape index: {}]   ;;  %s223_s2 = inlined_call_operand.vmem [shape: f32[1,96], index: 2, kind: input, shape index: {}]   ;;  %s224_s3 = inlined_call_operand.vmem [shape: f32[16,96], index: 3, kind: output, shape index: {}]  }
   0x1   :  { %v25_v0 = vld [vmem:[%s221_s1] sm:$0xff]  ;;  %v26_v1 = vld [vmem:[%s221_s1 + $0x8] sm:$0xff]  ;;  %v27_v2 = vld [vmem:[%s221_s1 + $0x10] sm:$0xff]  ;;  %20 = vst.msk [vmem:[#allocation2 + $0x8] sm:$0xff] %vm18_vm1, %v165_v3 }
   0x2   :  { %19 = vst.msk [vmem:[#allocation2] sm:$0xff] %vm18_vm1, %v165_v3  ;;  %v156_v4 = vpack.c.bf16 %v26_v1, %v25_v0  ;;  %v28_v5 = vld [vmem:[%s221_s1 + $0x18] sm:$0xff]  ;;  %v23_v6 = vld [vmem:[%s222_s0] sm:$0xff]  ;;  %v24_v8 = vld [vmem:[%s222_s0 + $0x8] sm:$0xff] }
   0x3   :  { %v160_v7 = vpack.c.bf16 %v28_v5, %v27_v2  ;;  %153 = vmatprep.mubr.msk.f32.mxu0 %vm29_vm0, %v23_v6  ;;  %v138_v15 = vld [vmem:[%s223_s2] ss:$0 sm:$0xff] }
   0x4   :  { %157 = vmatprep.subr.bf16.mxu0 %v156_v4 }
   0x5   :  { %159 = vmatpush3.bf16.msra.mxu0 %v156_v4 }
   0x6   :  { %161 = vmatprep.subr.bf16.mxu0 %v160_v7 }
   0x8   :  { %v22_v9 = vld [vmem:[#allocation2 + $0x8] sm:$0xff] }
   0x9   :  { %163 = vmatpush3.bf16.msra.mxu0 %v160_v7  ;;  %v21_v10 = vld [vmem:[#allocation2] sm:$0xff] }
   0xc   :  { %154 = vmatmul.mubr.msk.f32.vlgmr.msra.gmra.mrb[0].mxu0 %vm29_vm0, %v24_v8 }
  0xdf   :  { %v155_v11 = vpop.f32.mrb[0].mxu0 }
  0xe0   :  { %v112_v12 = vadd.f32 %v155_v11, %v22_v9  ;;  %v102_v13 = vpop.f32.mrb[1].mxu0 }
  0xe1   :  { %v111_v14 = vadd.f32 %v102_v13, %v21_v10 }
  0xe2   :  { %115 = vst.msk [vmem:[#allocation2 + $0x8] sm:$0xff] %vm18_vm1, %v112_v12 }
  0xe3   :  { %114 = vst.msk [vmem:[#allocation2] sm:$0xff] %vm18_vm1, %v111_v14 }
  0xe9   :  { %v120_v16 = vld [vmem:[#allocation2 + $0x8] sm:$0xff] }
  0xea   :  { %v129_v17 = vadd.f32 %v138_v15, %v120_v16  ;;  %v119_v18 = vld [vmem:[#allocation2] sm:$0xff] }
  0xeb   :  { %v128_v19 = vadd.f32 %v138_v15, %v119_v18 }
  0xec   :  { %131 = vst.msk [vmem:[%s224_s3 + $0x8] sm:$0xff] %vm18_vm1, %v129_v17 }
  0xed   :  { %130 = vst.msk [vmem:[%s224_s3] sm:$0xff] %vm18_vm1, %v128_v19 }

// kernel: forward.15
= control target key start
LH: loop header
LB: loop body
LE: loop exit
PB: predicated region body
PF: predicated region fallthrough
CT: control target
= control target key end

     0   :  { %s631_s12 = smov 0   ;;  %s700_s0 = inlined_call_operand.vmem [shape: f32[2,10,32], index: 0, kind: input, shape index: {}]   ;;  %s701_s1 = inlined_call_operand.vmem [shape: f32[3,32,32], index: 1, kind: input, shape index: {}]   ;;  %s702_s2 = inlined_call_operand.vmem [shape: f32[1,32], index: 2, kind: input, shape index: {}]   ;;  %s703_s3 = inlined_call_operand.vmem [shape: f32[2,8,32], index: 3, kind: output, shape index: {}]  }
   0x1 LB: > { %s498_s13 = sadd.s32 4294967295, %s606_s12   ;;  %p502_p0 = scmp.ge.s32.totalorder %s606_s12, 1  ;;  %s606_s12 = sphi %s631_s12, %s13_s12  }
   0x2   : > { %p137_p1 = scmp.lt.s32.totalorder %s606_s12, 3 }
   0x4   : > { %p138_p2 = pnand %p502_p0, %p137_p1 }
   0x5   : > { %v506_v0 = vld [vmem:[%s701_s1 + $0x20] sm:$0xff] (!%p138_p2)  ;;  %v507_v1 = vld [vmem:[%s701_s1 + $0x28] sm:$0xff] (!%p138_p2)  ;;  %v608_v3 = vmov (!%p138_p2), 0.0|0.0   ;;  %v508_v6 = vld [vmem:[%s701_s1 + $0x30] sm:$0xff] (!%p138_p2)  ;;  %p160_p3 = scmp.lt.s32.totalorder (!%p138_p2), %s498_s13, 1  ;;  %vm609_vm0 = vmmov (!%p138_p2), 0  }
   0x6   : > { %141 = sbr.rel (%p138_p2) target bundleno = 296 (0x128), region = 32  ;;  %v171_v2 = vld [vmem:[%s701_s1] sm:$0xff] (!%p138_p2)  ;;  %569 = vmatprep.subr.bf16.mxu0 (!%p138_p2), %v608_v3  ;;  %v570_v4 = vpack.c.bf16 (!%p138_p2), %v507_v1, %v506_v0  ;;  %575 = vmatprep.subr.bf16.mxu1 (!%p138_p2), %v608_v3  ;;  %v172_v5 = vld [vmem:[%s701_s1 + $0x8] sm:$0xff] (!%p138_p2)  ;;  %v509_v7 = vld [vmem:[%s701_s1 + $0x38] sm:$0xff] (!%p138_p2)  ;;  %v610_v11 = vmov (!%p138_p2), 0.0   ;;  %vm182_vm1 = vcmask (!%p138_p2), 1046528  }
   0x7   : > { %v576_v8 = vpack.c.bf16 (!%p138_p2), %v172_v5, %v171_v2  ;;  %v173_v9 = vld [vmem:[%s701_s1 + $0x10] sm:$0xff] (!%p138_p2)  ;;  %v174_v10 = vld [vmem:[%s701_s1 + $0x18] sm:$0xff] (!%p138_p2)  ;;  %544 = vmatprep.mubr.msk.f32.mxu0 (!%p138_p2), %vm609_vm0, %v610_v11  ;;  %555 = vmatprep.mubr.msk.f32.mxu1 (!%p138_p2), %vm609_vm0, %v610_v11  ;;  %v573_v12 = vpack.c.bf16 (!%p138_p2), %v509_v7, %v508_v6  ;;  %v512_v14 = vld [vmem:[%s701_s1 + $0x40] sm:$0xff] (!%p138_p2)  ;;  %vm186_vm2 = vcmask (!%p138_p2), 261120   ;;  %vm336_vm3 = vcmask (!%p138_p2), 1045504  }
   0x8   : > { %571 = vmatpush3.bf16.msra.mxu0 (!%p138_p2), %v570_v4  ;;  %v579_v13 = vpack.c.bf16 (!%p138_p2), %v174_v10, %v173_v9  ;;  %v513_v15 = vld [vmem:[%s701_s1 + $0x48] sm:$0xff] (!%p138_p2)  ;;  %v514_v21 = vld [vmem:[%s701_s1 + $0x50] sm:$0xff] (!%p138_p2)  ;;  %v515_v22 = vld [vmem:[%s701_s1 + $0x58] sm:$0xff] (!%p138_p2) }
   0x9   : > { %577 = vmatpush3.bf16.msra.mxu1 (!%p138_p2), %v576_v8  ;;  %572 = vmatprep.subr.bf16.mxu0 (!%p138_p2), %v608_v3  ;;  %v582_v20 = vpack.c.bf16 (!%p138_p2), %v513_v15, %v512_v14  ;;  %v585_v25 = vpack.c.bf16 (!%p138_p2), %v515_v22, %v514_v21  ;;  %v517_v34 = vld [vmem:[%s702_s2] ss:$0 sm:$0xff] (!%p138_p2) }
   0xa   : > { %578 = vmatprep.subr.bf16.mxu1 (!%p138_p2), %v608_v3 }
   0xc   : > { %574 = vmatpush3.bf16.msra.mxu0 (!%p138_p2), %v573_v12 }
   0xd   : > { %s705_s13 = smov (!%p160_p3, %s498_s13), 1  ;;  %580 = vmatpush3.bf16.msra.mxu1 %v579_v13  ;;  %581 = vmatprep.subr.bf16.mxu0 %v608_v3 }
   0xe   : > { %s520_s30 = sshll.u32 %s705_s13, 4  ;;  %s505_s19 = sshll.u32 %s705_s13, 3 }
   0xf   : > { %s164_s10 = scalar_lea.vmem %s700_s0, %s520_s30  ;;  %s168_s22 = scalar_lea.vmem %s703_s3, %s505_s19 }
  0x10   : > { %v169_v16 = vld [vmem:[%s164_s10] sm:$0xff]  ;;  %v170_v17 = vld [vmem:[%s164_s10 + $0x8] sm:$0x3] }
  0x11   : > { %v183_v18 = vrot.slane %v169_v16, 1  ;;  %v184_v19 = vrot.slane %v170_v17, 1  ;;  %556 = vmatmul.mubr.msk.f32.vlgmr.msra.gmra.mrb[0].mxu1 %vm186_vm2, %v169_v16  ;;  %v338_v24 = vrot.slane %v170_v17, 2  ;;  %v337_v26 = vrot.slane %v169_v16, 2 }
  0x13   : > { %v185_v23 = vsel %vm182_vm1, %v183_v18, %v184_v19  ;;  %v339_v27 = vsel %vm336_vm3, %v337_v26, %v338_v24 }
  0x14   : > { %545 = vmatmul.mubr.msk.f32.vlgmr.msra.gmra.mrb[0].mxu0 %vm186_vm2, %v185_v23 }
  0x15   : > { %583 = vmatpush3.bf16.msra.mxu0 %v582_v20  ;;  %566 = vmatprep.mubr.msk.f32.mxu0 %vm609_vm0, %v610_v11 }
  0x16   : > { %584 = vmatprep.subr.bf16.mxu0 %v608_v3 }
  0x19   : > { %586 = vmatpush3.bf16.msra.mxu0 %v585_v25 }
  0x1c   : > { %567 = vmatmul.mubr.msk.f32.vlgmr.msra.gmra.mrb[2].mxu0 %vm186_vm2, %v339_v27 }
  0xe4   : > { %v327_v29 = vpop.f32.mrb[0].mxu1 }
  0xe5   : > { %v557_v32 = vpop.f32.mrb[1].mxu1 }
  0xe7   : > { %v255_v28 = vpop.f32.mrb[0].mxu0 }
  0xe8   : > { %v546_v30 = vpop.f32.mrb[1].mxu0  ;;  %v328_v31 = vadd.f32 %v327_v29, %v255_v28 }
  0xef   : > { %v408_v33 = vpop.f32.mrb[2].mxu0 }
  0xf0   : > { %v412_v35 = vadd.f32 %v408_v33, %v328_v31  ;;  %v568_v36 = vpop.f32.mrb[3].mxu0 }
  0xf2   : > { %v420_v37 = vadd.f32 %v517_v34, %v412_v35 }
  0xf4   : > { %v421_v38 = vmax.f32 %v420_v37, 0.0 }
  0xf6   : > { %v422_v39 = vsel %vm186_vm2, %v421_v38, 0.0 }
  0xf7   : > { %v423_v40 = vrot.slane %v422_v39, 4 }
  0xf9   : > { %v424_v41 = vadd.f32 %v423_v40, %v422_v39 }
  0xfb   : > { %v425_v42 = vrot.slane %v424_v41, 2 }
  0xfd   : > { %v426_v43 = vadd.f32 %v425_v42, %v424_v41 }
  0xff   : > { %v427_v44 = vrot.slane %v426_v43, 1 }
 0x101   : > { %v428_v45 = vadd.f32 %v427_v44, %v426_v43 }
 0x103   : > { %v430_v46 = vmul.f32 0.125, %v428_v45 }
 0x105   : > { %v431_v47 = vsub.f32 %v421_v38, %v430_v46 }
 0x107   : > { %v432_v48 = vmul.f32 %v431_v47, %v431_v47 }
 0x109   : > { %v433_v49 = vsel %vm186_vm2, %v432_v48, 0.0 }
 0x10a   : > { %v434_v50 = vrot.slane %v433_v49, 4 }
 0x10c   : > { %v435_v51 = vadd.f32 %v434_v50, %v433_v49 }
 0x10e   : > { %v436_v52 = vrot.slane %v435_v51, 2 }
 0x110   : > { %v437_v53 = vadd.f32 %v436_v52, %v435_v51 }
 0x112   : > { %v438_v54 = vrot.slane %v437_v53, 1 }
 0x114   : > { %v439_v55 = vadd.f32 %v438_v54, %v437_v53 }
 0x116   : > { %v440_v56 = vmul.f32 0.125, %v439_v55 }
 0x118   : > { %v441_v57 = vadd.f32 1e-05, %v440_v56 }
 0x11a   : > { %598 = vrsqrt.f32 %v441_v57 }
 0x124   : > { %v599_v58 = vpop.eup %598 }
 0x125   : > { %v443_v59 = vmul.f32 %v599_v58, %v431_v47 }
 0x127   : > { %444 = vst.msk [vmem:[%s168_s22] sm:$0xff] %vm186_vm2, %v443_v59 }
 0x128 PF: > { %s13_s12 = sadd.s32 1, %s606_s12  }
 0x129   : > { %p10_p4 = scmp.ge.s32.totalorder %s13_s12, 4  }
 0x12b   :  { %12 = sbr.rel (!%p10_p4) target bundleno = 1 (0x1), region = 64 }

// kernel: forward.16
= control target key start
LH: loop header
LB: loop body
LE: loop exit
PB: predicated region body
PF: predicated region fallthrough
CT: control target
= control target key end

     0   :  { %s655_s12 = smov 0   ;;  %s726_s0 = inlined_call_operand.vmem [shape: f32[2,10,32], index: 0, kind: input, shape index: {}]   ;;  %s727_s1 = inlined_call_operand.vmem [shape: f32[3,32,32], index: 1, kind: input, shape index: {}]   ;;  %s728_s2 = inlined_call_operand.vmem [shape: f32[1,32], index: 2, kind: input, shape index: {}]   ;;  %s729_s3 = inlined_call_operand.vmem [shape: f32[2,8,32], index: 3, kind: output, shape index: {}]  }
   0x1 LB: > { %s520_s13 = sadd.s32 4294967295, %s630_s12   ;;  %p524_p0 = scmp.ge.s32.totalorder %s630_s12, 1  ;;  %s630_s12 = sphi %s655_s12, %s13_s12  }
   0x2   : > { %p137_p1 = scmp.lt.s32.totalorder %s630_s12, 3 }
   0x4   : > { %p138_p2 = pnand %p524_p0, %p137_p1 }
   0x5   : > { %v528_v0 = vld [vmem:[%s727_s1 + $0x20] sm:$0xff] (!%p138_p2)  ;;  %v529_v1 = vld [vmem:[%s727_s1 + $0x28] sm:$0xff] (!%p138_p2)  ;;  %v632_v3 = vmov (!%p138_p2), 0.0|0.0   ;;  %v530_v6 = vld [vmem:[%s727_s1 + $0x30] sm:$0xff] (!%p138_p2)  ;;  %p160_p3 = scmp.lt.s32.totalorder (!%p138_p2), %s520_s13, 1  ;;  %vm633_vm0 = vmmov (!%p138_p2), 0  }
   0x6   : > { %141 = sbr.rel (%p138_p2) target bundleno = 347 (0x15b), region = 32  ;;  %v171_v2 = vld [vmem:[%s727_s1] sm:$0xff] (!%p138_p2)  ;;  %591 = vmatprep.subr.bf16.mxu0 (!%p138_p2), %v632_v3  ;;  %v592_v4 = vpack.c.bf16 (!%p138_p2), %v529_v1, %v528_v0  ;;  %597 = vmatprep.subr.bf16.mxu1 (!%p138_p2), %v632_v3  ;;  %v172_v5 = vld [vmem:[%s727_s1 + $0x8] sm:$0xff] (!%p138_p2)  ;;  %v531_v7 = vld [vmem:[%s727_s1 + $0x38] sm:$0xff] (!%p138_p2)  ;;  %v634_v11 = vmov (!%p138_p2), 0.0   ;;  %vm182_vm1 = vcmask (!%p138_p2), 1046528  }
   0x7   : > { %v598_v8 = vpack.c.bf16 (!%p138_p2), %v172_v5, %v171_v2  ;;  %v173_v9 = vld [vmem:[%s727_s1 + $0x10] sm:$0xff] (!%p138_p2)  ;;  %v174_v10 = vld [vmem:[%s727_s1 + $0x18] sm:$0xff] (!%p138_p2)  ;;  %566 = vmatprep.mubr.msk.f32.mxu0 (!%p138_p2), %vm633_vm0, %v634_v11  ;;  %577 = vmatprep.mubr.msk.f32.mxu1 (!%p138_p2), %vm633_vm0, %v634_v11  ;;  %v595_v12 = vpack.c.bf16 (!%p138_p2), %v531_v7, %v530_v6  ;;  %v534_v14 = vld [vmem:[%s727_s1 + $0x40] sm:$0xff] (!%p138_p2)  ;;  %vm186_vm2 = vcmask (!%p138_p2), 261120   ;;  %vm336_vm3 = vcmask (!%p138_p2), 1045504  }
   0x8   : > { %593 = vmatpush3.bf16.msra.mxu0 (!%p138_p2), %v592_v4  ;;  %v601_v13 = vpack.c.bf16 (!%p138_p2), %v174_v10, %v173_v9  ;;  %v535_v15 = vld [vmem:[%s727_s1 + $0x48] sm:$0xff] (!%p138_p2)  ;;  %v536_v21 = vld [vmem:[%s727_s1 + $0x50] sm:$0xff] (!%p138_p2)  ;;  %v537_v22 = vld [vmem:[%s727_s1 + $0x58] sm:$0xff] (!%p138_p2) }
   0x9   : > { %599 = vmatpush3.bf16.msra.mxu1 (!%p138_p2), %v598_v8  ;;  %594 = vmatprep.subr.bf16.mxu0 (!%p138_p2), %v632_v3  ;;  %v604_v20 = vpack.c.bf16 (!%p138_p2), %v535_v15, %v534_v14  ;;  %v607_v25 = vpack.c.bf16 (!%p138_p2), %v537_v22, %v536_v21  ;;  %v539_v34 = vld [vmem:[%s728_s2] ss:$0 sm:$0xff] (!%p138_p2) }
   0xa   : > { %600 = vmatprep.subr.bf16.mxu1 (!%p138_p2), %v632_v3 }
   0xc   : > { %596 = vmatpush3.bf16.msra.mxu0 (!%p138_p2), %v595_v12 }
   0xd   : > { %s731_s13 = smov (!%p160_p3, %s520_s13), 1  ;;  %602 = vmatpush3.bf16.msra.mxu1 %v601_v13  ;;  %603 = vmatprep.subr.bf16.mxu0 %v632_v3 }
   0xe   : > { %s542_s30 = sshll.u32 %s731_s13, 4  ;;  %s527_s19 = sshll.u32 %s731_s13, 3 }
   0xf   : > { %s164_s10 = scalar_lea.vmem %s726_s0, %s542_s30  ;;  %s168_s22 = scalar_lea.vmem %s729_s3, %s527_s19 }
  0x10   : > { %v169_v16 = vld [vmem:[%s164_s10] sm:$0xff]  ;;  %v170_v17 = vld [vmem:[%s164_s10 + $0x8] sm:$0x3] }
  0x11   : > { %v183_v18 = vrot.slane %v169_v16, 1  ;;  %v184_v19 = vrot.slane %v170_v17, 1  ;;  %578 = vmatmul.mubr.msk.f32.vlgmr.msra.gmra.mrb[0].mxu1 %vm186_vm2, %v169_v16  ;;  %v338_v24 = vrot.slane %v170_v17, 2  ;;  %v337_v26 = vrot.slane %v169_v16, 2 }
  0x13   : > { %v185_v23 = vsel %vm182_vm1, %v183_v18, %v184_v19  ;;  %v339_v27 = vsel %vm336_vm3, %v337_v26, %v338_v24 }
  0x14   : > { %567 = vmatmul.mubr.msk.f32.vlgmr.msra.gmra.mrb[0].mxu0 %vm186_vm2, %v185_v23 }
  0x15   : > { %605 = vmatpush3.bf16.msra.mxu0 %v604_v20  ;;  %588 = vmatprep.mubr.msk.f32.mxu0 %vm633_vm0, %v634_v11 }
  0x16   : > { %606 = vmatprep.subr.bf16.mxu0 %v632_v3 }
  0x19   : > { %608 = vmatpush3.bf16.msra.mxu0 %v607_v25 }
  0x1c   : > { %589 = vmatmul.mubr.msk.f32.vlgmr.msra.gmra.mrb[2].mxu0 %vm186_vm2, %v339_v27 }
  0xe4   : > { %v327_v29 = vpop.f32.mrb[0].mxu1 }
  0xe5   : > { %v579_v32 = vpop.f32.mrb[1].mxu1 }
  0xe7   : > { %v255_v28 = vpop.f32.mrb[0].mxu0 }
  0xe8   : > { %v568_v30 = vpop.f32.mrb[1].mxu0  ;;  %v328_v31 = vadd.f32 %v327_v29, %v255_v28 }
  0xef   : > { %v408_v33 = vpop.f32.mrb[2].mxu0 }
  0xf0   : > { %v412_v35 = vadd.f32 %v408_v33, %v328_v31  ;;  %v590_v36 = vpop.f32.mrb[3].mxu0 }
  0xf2   : > { %v420_v37 = vadd.f32 %v539_v34, %v412_v35 }
  0xf4   : > { %v421_v38 = vmax.f32 %v420_v37, 0.0 }
  0xf6   : > { %v422_v39 = vsel %vm186_vm2, %v421_v38, 0.0 }
  0xf7   : > { %v423_v40 = vrot.slane %v422_v39, 4 }
  0xf9   : > { %v424_v41 = vadd.f32 %v423_v40, %v422_v39 }
  0xfb   : > { %v425_v42 = vrot.slane %v424_v41, 2 }
  0xfd   : > { %v426_v43 = vadd.f32 %v425_v42, %v424_v41 }
  0xff   : > { %v427_v44 = vrot.slane %v426_v43, 1 }
 0x101   : > { %v428_v45 = vadd.f32 %v427_v44, %v426_v43 }
 0x103   : > { %v430_v46 = vmul.f32 0.125, %v428_v45 }
 0x105   : > { %v431_v47 = vsub.f32 %v421_v38, %v430_v46 }
 0x107   : > { %v432_v48 = vmul.f32 %v431_v47, %v431_v47 }
 0x109   : > { %v433_v49 = vsel %vm186_vm2, %v432_v48, 0.0 }
 0x10a   : > { %v434_v50 = vrot.slane %v433_v49, 4 }
 0x10c   : > { %v435_v51 = vadd.f32 %v434_v50, %v433_v49 }
 0x10e   : > { %v436_v52 = vrot.slane %v435_v51, 2 }
 0x110   : > { %v437_v53 = vadd.f32 %v436_v52, %v435_v51 }
 0x112   : > { %v438_v54 = vrot.slane %v437_v53, 1 }
 0x114   : > { %v439_v55 = vadd.f32 %v438_v54, %v437_v53 }
 0x116   : > { %v440_v56 = vmul.f32 0.125, %v439_v55 }
 0x118   : > { %v441_v57 = vadd.f32 1e-05, %v440_v56 }
 0x11a   : > { %620 = vrsqrt.f32 %v441_v57 }
 0x124   : > { %v621_v58 = vpop.eup %620 }
 0x125   : > { %v443_v59 = vmul.f32 %v621_v58, %v431_v47 }
 0x127   : > { %v444_v60 = vmax.f32 %v443_v59, 0.0 }
 0x129   : > { %v445_v61 = vsel %vm186_vm2, %v444_v60, 0.0 }
 0x12a   : > { %v446_v62 = vrot.slane %v445_v61, 4 }
 0x12c   : > { %v447_v63 = vadd.f32 %v446_v62, %v445_v61 }
 0x12e   : > { %v448_v0 = vrot.slane %v447_v63, 2 }
 0x130   : > { %v449_v1 = vadd.f32 %v448_v0, %v447_v63 }
 0x132   : > { %v450_v2 = vrot.slane %v449_v1, 1 }
 0x134   : > { %v451_v3 = vadd.f32 %v450_v2, %v449_v1 }
 0x136   : > { %v452_v4 = vmul.f32 0.125, %v451_v3 }
 0x138   : > { %v453_v5 = vsub.f32 %v444_v60, %v452_v4 }
 0x13a   : > { %v454_v6 = vmul.f32 %v453_v5, %v453_v5 }
 0x13c   : > { %v455_v7 = vsel %vm186_vm2, %v454_v6, 0.0 }
 0x13d   : > { %v456_v8 = vrot.slane %v455_v7, 4 }
 0x13f   : > { %v457_v9 = vadd.f32 %v456_v8, %v455_v7 }
 0x141   : > { %v458_v10 = vrot.slane %v457_v9, 2 }
 0x143   : > { %v459_v11 = vadd.f32 %v458_v10, %v457_v9 }
 0x145   : > { %v460_v12 = vrot.slane %v459_v11, 1 }
 0x147   : > { %v461_v13 = vadd.f32 %v460_v12, %v459_v11 }
 0x149   : > { %v462_v14 = vmul.f32 0.125, %v461_v13 }
 0x14b   : > { %v463_v15 = vadd.f32 1e-05, %v462_v14 }
 0x14d   : > { %622 = vrsqrt.f32 %v463_v15 }
 0x157   : > { %v623_v16 = vpop.eup %622 }
 0x158   : > { %v465_v17 = vmul.f32 %v623_v16, %v453_v5 }
 0x15a   : > { %466 = vst.msk [vmem:[%s168_s22] sm:$0xff] %vm186_vm2, %v465_v17 }
 0x15b PF: > { %s13_s12 = sadd.s32 1, %s630_s12  }
 0x15c   : > { %p10_p4 = scmp.ge.s32.totalorder %s13_s12, 4  }
 0x15e   :  { %12 = sbr.rel (!%p10_p4) target bundleno = 1 (0x1), region = 64 }

// kernel: forward.18
= control target key start
LH: loop header
LB: loop body
LE: loop exit
PB: predicated region body
PF: predicated region fallthrough
CT: control target
= control target key end

     0   :  { %s599_s6 = smov 0   ;;  %s638_s0 = inlined_call_operand.vmem [shape: f32[2,8,96], index: 0, kind: input, shape index: {}]   ;;  %s639_s1 = inlined_call_operand.vmem [shape: f32[2,8,32], index: 1, kind: output, shape index: {}]  }
   0x1 LB: > { %s506_s7 = sadd.s32 4294967295, %s579_s6   ;;  %p510_p0 = scmp.ge.s32.totalorder %s579_s6, 1  ;;  %s579_s6 = sphi %s599_s6, %s11_s6  }
   0x2   : > { %p86_p1 = scmp.lt.s32.totalorder %s579_s6, 3 }
   0x4   : > { %p87_p2 = pnand %p510_p0, %p86_p1 }
   0x5   : > { %p104_p3 = scmp.lt.s32.totalorder (!%p87_p2), %s506_s7, 1  ;;  %v581_v0 = vmov (!%p87_p2), 0.0   ;;  %vm582_vm0 = vmmov (!%p87_p2), 0   ;;  %s583_s12 = smov (!%p87_p2), 96   ;;  %vm117_vm1 = vcmask (!%p87_p2), 130048   ;;  %vm193_vm2 = vcmask (!%p87_p2), 64512  }
   0x6   : > { %90 = sbr.rel (%p87_p2) target bundleno = 1519 (0x5ef), region = 24  ;;  %529 = vmatprep.subr.mxu0 (!%p87_p2), %v581_v0  ;;  %531 = vmatprep.mubr.msk.f32.mxu0 (!%p87_p2), %vm582_vm0, %v581_v0  ;;  %s584_s13 = smov (!%p87_p2), 64   ;;  %vm451_vm3 = vcmask (!%p87_p2), 261248  }
   0x7   : > { %534 = vmatprep.subr.mxu1 (!%p87_p2), %v581_v0  ;;  %536 = vmatprep.mubr.msk.f32.mxu1 (!%p87_p2), %vm582_vm0, %v581_v0  ;;  %s585_s14 = smov (!%p87_p2), 80   ;;  %s586_s15 = smov (!%p87_p2), 112  }
   0x8   : > { %s587_s19 = smov (!%p87_p2), 48   ;;  %s588_s20 = smov (!%p87_p2), 16  }
   0xd   : > { %s641_s7 = smov (!%p104_p3, %s506_s7), 1 }
   0xe   : > { %s511_s8 = sshll.u32 %s641_s7, 3 }
   0xf   : > { %s107_s11 = scalar_lea.vmem %s638_s0, %s511_s8  ;;  %s111_s18 = scalar_lea.vmem %s639_s1, %s511_s8 }
  0x10   : > { %v112_v1 = vld [vmem:[%s107_s11] sm:$0xff] }
  0x11   : > { %115 = vrot.lane.b32.xlu0 %v112_v1, %s583_s12  ;;  %v113_v3 = vmul.f32 0.25, %v112_v1  ;;  %205 = vrot.lane.b32.xlu1 %v112_v1, %s584_s13 }
  0x15   : > { %284 = vrot.lane.b32.xlu1 %v112_v1, %s585_s14 }
  0x83   : > { %v116_v2 = vpop.permute.xlu0 %115  ;;  %v206_v7 = vpop.permute.xlu1 %205 }
  0x84   : > { %530 = vmatpush3.xpose.msk.msra.mxu0 %vm117_vm1, %v116_v2  ;;  %535 = vmatpush3.msra.mxu1 %v206_v7 }
  0x85   : > { %544 = vmatprep.subr.mxu0 %v581_v0  ;;  %539 = vmatprep.subr.mxu1 %v581_v0 }
  0x87   : > { %532 = vmatmul.mubr.msk.f32.vlgmr.msra.gmra.mrb[0].mxu0 %vm117_vm1, %v113_v3  ;;  %v285_v13 = vpop.permute.xlu1 %284 }
  0x88   : > { %546 = vmatprep.mubr.msk.f32.mxu0 %vm582_vm0, %v581_v0 }
 0x15a   : > { %v189_v4 = vpop.f32.mrb[0].mxu0 }
 0x15b   : > { %v533_v5 = vpop.f32.mrb[1].mxu0  ;;  %v194_v6 = vsel %vm193_vm2, %v189_v4, -inf }
 0x15c   : > { %195 = vmax.xlane.f32.xlu0 %v194_v6 }
 0x1e9   : > { %v196_v8 = vpop.xlane.xlu0 %195 }
 0x1ea   : > { %v197_v9 = vsub.f32 %v189_v4, %v196_v8 }
 0x1ec   : > { %v198_v10 = vmul.f32 1.442695, %v197_v9 }
 0x1ee   : > { %565 = vpow2.f32 %v198_v10 }
 0x1f8   : > { %v566_v11 = vpop.eup %565 }
 0x1f9   : > { %v200_v12 = vsel %vm193_vm2, %v566_v11, 0.0 }
 0x1fa   : > { %201 = vadd.xlane.f32.xlu1 %v200_v12 }
 0x20b   : > { %282 = vrot.lane.b32.xlu1 %v113_v3, %s586_s15 }
 0x287   : > { %v202_v14 = vpop.xlane.xlu1 %201 }
 0x288   : > { %567 = vrcp.f32 %v202_v14 }
 0x28b   : > { %v283_v17 = vpop.permute.xlu1 %282 }
 0x292   : > { %v568_v15 = vpop.eup %567 }
 0x293   : > { %v204_v16 = vmul.f32 %v568_v15, %v566_v11 }
 0x295   : > { %537 = vmatmul.mubr.msk.f32.vlgmr.msra.gmra.mrb[0].mxu1 %vm193_vm2, %v204_v16 }
 0x296   : > { %540 = vmatpush3.xpose.msk.msra.mxu1 %vm117_vm1, %v285_v13  ;;  %541 = vmatprep.mubr.msk.f32.mxu1 %vm582_vm0, %v581_v0 }
 0x299   : > { %542 = vmatmul.mubr.msk.f32.vlgmr.msra.gmra.mrb[2].mxu1 %vm117_vm1, %v283_v17 }
 0x368   : > { %v277_v18 = vpop.f32.mrb[0].mxu1 }
 0x369   : > { %281 = vst.msk [vmem:[%s111_s18] sm:$0xff] %vm117_vm1, %v277_v18  ;;  %v538_v19 = vpop.f32.mrb[1].mxu1 }
 0x36c   : > { %v356_v20 = vpop.f32.mrb[2].mxu1 }
 0x36d   : > { %v543_v21 = vpop.f32.mrb[3].mxu1  ;;  %v360_v22 = vsel %vm193_vm2, %v356_v20, -inf }
 0x36e   : > { %361 = vmax.xlane.f32.xlu1 %v360_v22 }
 0x3fb   : > { %v362_v23 = vpop.xlane.xlu1 %361 }
 0x3fc   : > { %v363_v24 = vsub.f32 %v356_v20, %v362_v23 }
 0x3fe   : > { %v364_v25 = vmul.f32 1.442695, %v363_v24 }
 0x400   : > { %569 = vpow2.f32 %v364_v25 }
 0x40a   : > { %v570_v26 = vpop.eup %569 }
 0x40b   : > { %v366_v27 = vsel %vm193_vm2, %v570_v26, 0.0 }
 0x40c   : > { %367 = vadd.xlane.f32.xlu0 %v366_v27 }
 0x422   : > { %371 = vrot.lane.b32.xlu0 %v112_v1, %s587_s19 }
 0x499   : > { %v368_v28 = vpop.xlane.xlu0 %367 }
 0x49a   : > { %571 = vrcp.f32 %v368_v28 }
 0x49d   : > { %v372_v29 = vpop.permute.xlu0 %371 }
 0x49e   : > { %545 = vmatpush3.msra.mxu0 %v372_v29 }
 0x4a4   : > { %v572_v30 = vpop.eup %571 }
 0x4a5   : > { %v370_v31 = vmul.f32 %v572_v30, %v570_v26 }
 0x4a7   : > { %547 = vmatmul.mubr.msk.f32.vlgmr.msra.gmra.mrb[2].mxu0 %vm193_vm2, %v370_v31 }
 0x57a   : > { %v443_v32 = vpop.f32.mrb[2].mxu0 }
 0x57b   : > { %448 = vrot.lane.b32.xlu0 %v443_v32, %s588_s20  ;;  %v548_v33 = vpop.f32.mrb[3].mxu0 }
 0x5ed   : > { %v449_v34 = vpop.permute.xlu0 %448 }
 0x5ee   : > { %452 = vst.msk [vmem:[%s111_s18] sm:$0xff] %vm451_vm3, %v449_v34 }
 0x5ef PF: > { %s11_s6 = sadd.s32 1, %s579_s6  }
 0x5f0   : > { %p8_p4 = scmp.ge.s32.totalorder %s11_s6, 4  }
 0x5f2   :  { %10 = sbr.rel (!%p8_p4) target bundleno = 1 (0x1), region = 54 }

// kernel: forward.19
= control target key start
LH: loop header
LB: loop body
LE: loop exit
PB: predicated region body
PF: predicated region fallthrough
CT: control target
= control target key end

     0   :  { %vm36_vm0 = vcmask 261120   ;;  %s289_s1 = inlined_call_operand.vmem [shape: f32[32,32], index: 1, kind: input, shape index: {}]   ;;  %s290_s0 = inlined_call_operand.vmem [shape: f32[16,32], index: 0, kind: input, shape index: {}]   ;;  %s291_s2 = inlined_call_operand.vmem [shape: f32[1,32], index: 2, kind: input, shape index: {}]   ;;  %s292_s3 = inlined_call_operand.vmem [shape: f32[16,32], index: 3, kind: input, shape index: {}]   ;;  %s293_s4 = inlined_call_operand.vmem [shape: f32[1,32], index: 4, kind: input, shape index: {}]   ;;  %s294_s5 = inlined_call_operand.vmem [shape: f32[1,32], index: 5, kind: input, shape index: {}]   ;;  %s295_s6 = inlined_call_operand.vmem [shape: f32[16,32], index: 6, kind: output, shape index: {}]  }
   0x1   :  { %v25_v0 = vld [vmem:[%s289_s1] sm:$0xff]  ;;  %v26_v1 = vld [vmem:[%s289_s1 + $0x8] sm:$0xff]  ;;  %v27_v2 = vld [vmem:[%s289_s1 + $0x10] sm:$0xff] }
   0x2   :  { %v195_v3 = vpack.c.bf16 %v26_v1, %v25_v0  ;;  %v28_v4 = vld [vmem:[%s289_s1 + $0x18] sm:$0xff]  ;;  %v23_v5 = vld [vmem:[%s290_s0] sm:$0xff]  ;;  %v24_v7 = vld [vmem:[%s290_s0 + $0x8] sm:$0xff] }
   0x3   :  { %v199_v6 = vpack.c.bf16 %v28_v4, %v27_v2  ;;  %192 = vmatprep.mubr.msk.f32.mxu0 %vm36_vm0, %v23_v5  ;;  %v173_v8 = vld [vmem:[%s291_s2] ss:$0 sm:$0xff]  ;;  %v119_v14 = vld [vmem:[%s292_s3 + $0x8] sm:$0xff] }
   0x4   :  { %196 = vmatprep.subr.bf16.mxu0 %v195_v3  ;;  %v118_v11 = vld [vmem:[%s292_s3] sm:$0xff] }
   0x5   :  { %198 = vmatpush3.bf16.msra.mxu0 %v195_v3  ;;  %v176_v36 = vld [vmem:[%s293_s4] ss:$0 sm:$0xff] }
   0x6   :  { %200 = vmatprep.subr.bf16.mxu0 %v199_v6  ;;  %v177_v38 = vld [vmem:[%s294_s5] ss:$0 sm:$0xff] }
   0x9   :  { %202 = vmatpush3.bf16.msra.mxu0 %v199_v6 }
   0xc   :  { %193 = vmatmul.mubr.msk.f32.vlgmr.msra.gmra.mrb[0].mxu0 %vm36_vm0, %v24_v7 }
  0xdf   :  { %v194_v9 = vpop.f32.mrb[0].mxu0 }
  0xe0   :  { %v109_v10 = vpop.f32.mrb[1].mxu0  ;;  %v115_v12 = vadd.f32 %v194_v9, %v173_v8 }
  0xe1   :  { %v110_v13 = vadd.f32 %v173_v8, %v109_v10 }
  0xe2   :  { %v121_v17 = vadd.f32 %v119_v14, %v115_v12 }
  0xe3   :  { %v120_v15 = vadd.f32 %v118_v11, %v110_v13 }
  0xe4   :  { %v125_v18 = vsel %vm36_vm0, %v121_v17, 0.0 }
  0xe5   :  { %v122_v16 = vsel %vm36_vm0, %v120_v15, 0.0 }
  0xe6   :  { %123 = vadd.xlane.f32.xlu0 %v122_v16 }
  0xea   :  { %126 = vadd.xlane.f32.xlu0 %v125_v18 }
 0x173   :  { %v124_v19 = vpop.xlane.xlu0 %123 }
 0x174   :  { %v129_v20 = vmul.f32 0.03125, %v124_v19 }
 0x176   :  { %v131_v21 = vsub.f32 %v120_v15, %v129_v20 }
 0x177   :  { %v127_v22 = vpop.xlane.xlu0 %126 }
 0x178   :  { %v130_v23 = vmul.f32 0.03125, %v127_v22  ;;  %v133_v24 = vmul.f32 %v131_v21, %v131_v21 }
 0x17a   :  { %v132_v25 = vsub.f32 %v121_v17, %v130_v23  ;;  %v135_v26 = vsel %vm36_vm0, %v133_v24, 0.0 }
 0x17b   :  { %136 = vadd.xlane.f32.xlu1 %v135_v26 }
 0x17c   :  { %v134_v27 = vmul.f32 %v132_v25, %v132_v25 }
 0x17e   :  { %v138_v28 = vsel %vm36_vm0, %v134_v27, 0.0 }
 0x17f   :  { %139 = vadd.xlane.f32.xlu1 %v138_v28 }
 0x208   :  { %v137_v29 = vpop.xlane.xlu1 %136 }
 0x209   :  { %v141_v30 = vmul.f32 0.03125, %v137_v29 }
 0x20b   :  { %v143_v31 = vadd.f32 1e-05, %v141_v30 }
 0x20c   :  { %v140_v32 = vpop.xlane.xlu1 %139 }
 0x20d   :  { %203 = vrsqrt.f32 %v143_v31  ;;  %v142_v33 = vmul.f32 0.03125, %v140_v32 }
 0x20f   :  { %v144_v34 = vadd.f32 1e-05, %v142_v33 }
 0x211   :  { %205 = vrsqrt.f32 %v144_v34 }
 0x217   :  { %v204_v35 = vpop.eup %203 }
 0x218   :  { %v147_v37 = vmul.f32 %v204_v35, %v131_v21 }
 0x21a   :  { %v156_v39 = vmul.f32 %v176_v36, %v147_v37 }
 0x21b   :  { %v206_v40 = vpop.eup %205 }
 0x21c   :  { %v165_v41 = vadd.f32 %v177_v38, %v156_v39  ;;  %v148_v42 = vmul.f32 %v206_v40, %v132_v25 }
 0x21e   :  { %167 = vst.msk [vmem:[%s295_s6] sm:$0xff] %vm36_vm0, %v165_v41  ;;  %v157_v43 = vmul.f32 %v176_v36, %v148_v42 }
 0x220   :  { %v166_v44 = vadd.f32 %v177_v38, %v157_v43 }
 0x222   :  { %168 = vst.msk [vmem:[%s295_s6 + $0x8] sm:$0xff] %vm36_vm0, %v166_v44 }

// kernel: forward.20
= control target key start
LH: loop header
LB: loop body
LE: loop exit
PB: predicated region body
PF: predicated region fallthrough
CT: control target
= control target key end

     0   :  { %s608_s12 = smov 0   ;;  %s674_s0 = inlined_call_operand.vmem [shape: f32[2,10,32], index: 0, kind: input, shape index: {}]   ;;  %s675_s1 = inlined_call_operand.vmem [shape: f32[3,32,64], index: 1, kind: input, shape index: {}]   ;;  %s676_s2 = inlined_call_operand.vmem [shape: f32[1,64], index: 2, kind: input, shape index: {}]   ;;  %s677_s3 = inlined_call_operand.vmem [shape: f32[2,8,64], index: 3, kind: output, shape index: {}]  }
   0x1 LB: > { %s477_s13 = sadd.s32 4294967295, %s583_s12   ;;  %p481_p0 = scmp.ge.s32.totalorder %s583_s12, 1  ;;  %s583_s12 = sphi %s608_s12, %s13_s12  }
   0x2   : > { %p137_p1 = scmp.lt.s32.totalorder %s583_s12, 3 }
   0x4   : > { %p138_p2 = pnand %p481_p0, %p137_p1 }
   0x5   : > { %v485_v0 = vld [vmem:[%s675_s1 + $0x20] sm:$0xff] (!%p138_p2)  ;;  %v486_v1 = vld [vmem:[%s675_s1 + $0x28] sm:$0xff] (!%p138_p2)  ;;  %v585_v3 = vmov (!%p138_p2), 0.0|0.0   ;;  %v487_v6 = vld [vmem:[%s675_s1 + $0x30] sm:$0xff] (!%p138_p2)  ;;  %p160_p3 = scmp.lt.s32.totalorder (!%p138_p2), %s477_s13, 1  ;;  %vm586_vm0 = vmmov (!%p138_p2), 0  }
   0x6   : > { %141 = sbr.rel (%p138_p2) target bundleno = 247 (0xf7), region = 32  ;;  %v171_v2 = vld [vmem:[%s675_s1] sm:$0xff] (!%p138_p2)  ;;  %548 = vmatprep.subr.bf16.mxu0 (!%p138_p2), %v585_v3  ;;  %v549_v4 = vpack.c.bf16 (!%p138_p2), %v486_v1, %v485_v0  ;;  %554 = vmatprep.subr.bf16.mxu1 (!%p138_p2), %v585_v3  ;;  %v172_v5 = vld [vmem:[%s675_s1 + $0x8] sm:$0xff] (!%p138_p2)  ;;  %v488_v7 = vld [vmem:[%s675_s1 + $0x38] sm:$0xff] (!%p138_p2)  ;;  %v587_v11 = vmov (!%p138_p2), 0.0   ;;  %vm182_vm1 = vcmask (!%p138_p2), 1046528  }
   0x7   : > { %v555_v8 = vpack.c.bf16 (!%p138_p2), %v172_v5, %v171_v2  ;;  %v173_v9 = vld [vmem:[%s675_s1 + $0x10] sm:$0xff] (!%p138_p2)  ;;  %v174_v10 = vld [vmem:[%s675_s1 + $0x18] sm:$0xff] (!%p138_p2)  ;;  %523 = vmatprep.mubr.msk.f32.mxu0 (!%p138_p2), %vm586_vm0, %v587_v11  ;;  %534 = vmatprep.mubr.msk.f32.mxu1 (!%p138_p2), %vm586_vm0, %v587_v11  ;;  %v552_v12 = vpack.c.bf16 (!%p138_p2), %v488_v7, %v487_v6  ;;  %v491_v14 = vld [vmem:[%s675_s1 + $0x40] sm:$0xff] (!%p138_p2)  ;;  %vm186_vm2 = vcmask (!%p138_p2), 261120   ;;  %vm336_vm3 = vcmask (!%p138_p2), 1045504  }
   0x8   : > { %550 = vmatpush3.bf16.msra.mxu0 (!%p138_p2), %v549_v4  ;;  %v558_v13 = vpack.c.bf16 (!%p138_p2), %v174_v10, %v173_v9  ;;  %v492_v15 = vld [vmem:[%s675_s1 + $0x48] sm:$0xff] (!%p138_p2)  ;;  %v493_v21 = vld [vmem:[%s675_s1 + $0x50] sm:$0xff] (!%p138_p2)  ;;  %v494_v22 = vld [vmem:[%s675_s1 + $0x58] sm:$0xff] (!%p138_p2)  ;;  %vm422_vm4 = vcmask (!%p138_p2), 523264  }
   0x9   : > { %556 = vmatpush3.bf16.msra.mxu1 (!%p138_p2), %v555_v8  ;;  %551 = vmatprep.subr.bf16.mxu0 (!%p138_p2), %v585_v3  ;;  %v561_v20 = vpack.c.bf16 (!%p138_p2), %v492_v15, %v491_v14  ;;  %v564_v25 = vpack.c.bf16 (!%p138_p2), %v494_v22, %v493_v21  ;;  %v496_v34 = vld [vmem:[%s676_s2] ss:$0 sm:$0xff] (!%p138_p2) }
   0xa   : > { %557 = vmatprep.subr.bf16.mxu1 (!%p138_p2), %v585_v3 }
   0xc   : > { %553 = vmatpush3.bf16.msra.mxu0 (!%p138_p2), %v552_v12 }
   0xd   : > { %s679_s13 = smov (!%p160_p3, %s477_s13), 1  ;;  %559 = vmatpush3.bf16.msra.mxu1 %v558_v13  ;;  %560 = vmatprep.subr.bf16.mxu0 %v585_v3 }
   0xe   : > { %s499_s30 = sshll.u32 %s679_s13, 4  ;;  %s484_s19 = sshll.u32 %s679_s13, 3 }
   0xf   : > { %s164_s10 = scalar_lea.vmem %s674_s0, %s499_s30  ;;  %s168_s22 = scalar_lea.vmem %s677_s3, %s484_s19 }
  0x10   : > { %v169_v16 = vld [vmem:[%s164_s10] sm:$0xff]  ;;  %v170_v17 = vld [vmem:[%s164_s10 + $0x8] sm:$0x3] }
  0x11   : > { %v183_v18 = vrot.slane %v169_v16, 1  ;;  %v184_v19 = vrot.slane %v170_v17, 1  ;;  %535 = vmatmul.mubr.msk.f32.vlgmr.msra.gmra.mrb[0].mxu1 %vm186_vm2, %v169_v16  ;;  %v338_v24 = vrot.slane %v170_v17, 2  ;;  %v337_v26 = vrot.slane %v169_v16, 2 }
  0x13   : > { %v185_v23 = vsel %vm182_vm1, %v183_v18, %v184_v19  ;;  %v339_v27 = vsel %vm336_vm3, %v337_v26, %v338_v24 }
  0x14   : > { %524 = vmatmul.mubr.msk.f32.vlgmr.msra.gmra.mrb[0].mxu0 %vm186_vm2, %v185_v23 }
  0x15   : > { %562 = vmatpush3.bf16.msra.mxu0 %v561_v20  ;;  %545 = vmatprep.mubr.msk.f32.mxu0 %vm586_vm0, %v587_v11 }
  0x16   : > { %563 = vmatprep.subr.bf16.mxu0 %v585_v3 }
  0x19   : > { %565 = vmatpush3.bf16.msra.mxu0 %v564_v25 }
  0x1c   : > { %546 = vmatmul.mubr.msk.f32.vlgmr.msra.gmra.mrb[2].mxu0 %vm186_vm2, %v339_v27 }
  0xe4   : > { %v327_v29 = vpop.f32.mrb[0].mxu1 }
  0xe5   : > { %v536_v32 = vpop.f32.mrb[1].mxu1 }
  0xe7   : > { %v255_v28 = vpop.f32.mrb[0].mxu0 }
  0xe8   : > { %v525_v30 = vpop.f32.mrb[1].mxu0  ;;  %v328_v31 = vadd.f32 %v327_v29, %v255_v28 }
  0xef   : > { %v408_v33 = vpop.f32.mrb[2].mxu0 }
  0xf0   : > { %v412_v35 = vadd.f32 %v408_v33, %v328_v31  ;;  %v547_v36 = vpop.f32.mrb[3].mxu0 }
  0xf2   : > { %v420_v37 = vadd.f32 %v496_v34, %v412_v35 }
  0xf4   : > { %v421_v38 = vmax.f32 %v420_v37, 0.0 }
  0xf6   : > { %423 = vst.msk [vmem:[%s168_s22] sm:$0xff] %vm422_vm4, %v421_v38 }
  0xf7 PF: > { %s13_s12 = sadd.s32 1, %s583_s12  }
  0xf8   : > { %p10_p4 = scmp.ge.s32.totalorder %s13_s12, 4  }
  0xfa   :  { %12 = sbr.rel (!%p10_p4) target bundleno = 1 (0x1), region = 64 }

// kernel: forward.21
= control target key start
LH: loop header
LB: loop body
LE: loop exit
PB: predicated region body
PF: predicated region fallthrough
CT: control target
= control target key end

     0   :  { %s843_s21 = smov 0   ;;  %s969_s0 = inlined_call_operand.vmem [shape: f32[2,10,64], index: 0, kind: input, shape index: {}]   ;;  %s970_s1 = inlined_call_operand.vmem [shape: f32[3,64,32], index: 1, kind: input, shape index: {}]   ;;  %s971_s2 = inlined_call_operand.vmem [shape: f32[1,32], index: 2, kind: input, shape index: {}]   ;;  %s972_s3 = inlined_call_operand.vmem [shape: f32[2,8,32], index: 3, kind: input, shape index: {}]   ;;  %s973_s4 = inlined_call_operand.vmem [shape: f32[1,32], index: 4, kind: input, shape index: {}]   ;;  %s974_s5 = inlined_call_operand.vmem [shape: f32[1,32], index: 5, kind: input, shape index: {}]   ;;  %s975_s6 = inlined_call_operand.vmem [shape: f32[2,8,32], index: 6, kind: output, shape index: {}]  }
   0x1 LB: > { %s630_s22 = sadd.s32 4294967295, %s803_s21   ;;  %p634_p0 = scmp.ge.s32.totalorder %s803_s21, 1  ;;  %s803_s21 = sphi %s843_s21, %s16_s21  }
   0x2   : > { %p221_p1 = scmp.lt.s32.totalorder %s803_s21, 3 }
   0x4   : > { %p222_p2 = pnand %p634_p0, %p221_p1 }
   0x5   : > { %v639_v0 = vld [vmem:[%s970_s1 + $0x40] sm:$0xff] (!%p222_p2)  ;;  %v640_v1 = vld [vmem:[%s970_s1 + $0x48] sm:$0xff] (!%p222_p2)  ;;  %v805_v3 = vmov (!%p222_p2), 0.0|0.0   ;;  %v641_v6 = vld [vmem:[%s970_s1 + $0x50] sm:$0xff] (!%p222_p2)  ;;  %p254_p3 = scmp.lt.s32.totalorder (!%p222_p2), %s630_s22, 1  ;;  %vm806_vm0 = vmmov (!%p222_p2), 0  }
   0x6   : > { %225 = sbr.rel (%p222_p2) target bundleno = 571 (0x23b), region = 44  ;;  %v269_v2 = vld [vmem:[%s970_s1] sm:$0xff] (!%p222_p2)  ;;  %748 = vmatprep.subr.bf16.mxu0 (!%p222_p2), %v805_v3  ;;  %v749_v4 = vpack.c.bf16 (!%p222_p2), %v640_v1, %v639_v0  ;;  %760 = vmatprep.subr.bf16.mxu1 (!%p222_p2), %v805_v3  ;;  %v270_v5 = vld [vmem:[%s970_s1 + $0x8] sm:$0xff] (!%p222_p2)  ;;  %v642_v7 = vld [vmem:[%s970_s1 + $0x58] sm:$0xff] (!%p222_p2)  ;;  %v807_v11 = vmov (!%p222_p2), 0.0   ;;  %vm288_vm1 = vcmask (!%p222_p2), 1046528  }
   0x7   : > { %v761_v8 = vpack.c.bf16 (!%p222_p2), %v270_v5, %v269_v2  ;;  %v271_v9 = vld [vmem:[%s970_s1 + $0x10] sm:$0xff] (!%p222_p2)  ;;  %v272_v10 = vld [vmem:[%s970_s1 + $0x18] sm:$0xff] (!%p222_p2)  ;;  %707 = vmatprep.mubr.msk.f32.mxu0 (!%p222_p2), %vm806_vm0, %v807_v11  ;;  %726 = vmatprep.mubr.msk.f32.mxu1 (!%p222_p2), %vm806_vm0, %v807_v11  ;;  %v752_v12 = vpack.c.bf16 (!%p222_p2), %v642_v7, %v641_v6  ;;  %v643_v14 = vld [vmem:[%s970_s1 + $0x60] sm:$0xff] (!%p222_p2)  ;;  %vm292_vm2 = vcmask (!%p222_p2), 523264   ;;  %vm446_vm3 = vcmask (!%p222_p2), 1045504  }
   0x8   : > { %750 = vmatpush3.bf16.msra.mxu0 (!%p222_p2), %v749_v4  ;;  %v764_v13 = vpack.c.bf16 (!%p222_p2), %v272_v10, %v271_v9  ;;  %v644_v15 = vld [vmem:[%s970_s1 + $0x68] sm:$0xff] (!%p222_p2)  ;;  %v273_v16 = vld [vmem:[%s970_s1 + $0x20] sm:$0xff] (!%p222_p2)  ;;  %v645_v19 = vld [vmem:[%s970_s1 + $0x70] sm:$0xff] (!%p222_p2)  ;;  %vm533_vm4 = vcmask (!%p222_p2), 261120  }
   0x9   : > { %762 = vmatpush3.bf16.msra.mxu1 (!%p222_p2), %v761_v8  ;;  %751 = vmatprep.subr.bf16.mxu0 (!%p222_p2), %v805_v3  ;;  %v274_v17 = vld [vmem:[%s970_s1 + $0x28] sm:$0xff] (!%p222_p2)  ;;  %v755_v18 = vpack.c.bf16 (!%p222_p2), %v644_v15, %v643_v14  ;;  %v646_v21 = vld [vmem:[%s970_s1 + $0x78] sm:$0xff] (!%p222_p2)  ;;  %v275_v24 = vld [vmem:[%s970_s1 + $0x30] sm:$0xff] (!%p222_p2) }
   0xa   : > { %763 = vmatprep.subr.bf16.mxu1 (!%p222_p2), %v805_v3  ;;  %v767_v20 = vpack.c.bf16 (!%p222_p2), %v274_v17, %v273_v16  ;;  %v276_v25 = vld [vmem:[%s970_s1 + $0x38] sm:$0xff] (!%p222_p2)  ;;  %v758_v26 = vpack.c.bf16 (!%p222_p2), %v646_v21, %v645_v19  ;;  %v649_v30 = vld [vmem:[%s970_s1 + $0x80] sm:$0xff] (!%p222_p2)  ;;  %v650_v31 = vld [vmem:[%s970_s1 + $0x88] sm:$0xff] (!%p222_p2) }
   0xb   : > { %v770_v29 = vpack.c.bf16 (!%p222_p2), %v276_v25, %v275_v24  ;;  %v773_v33 = vpack.c.bf16 (!%p222_p2), %v650_v31, %v649_v30  ;;  %v651_v34 = vld [vmem:[%s970_s1 + $0x90] sm:$0xff] (!%p222_p2)  ;;  %v652_v35 = vld [vmem:[%s970_s1 + $0x98] sm:$0xff] (!%p222_p2)  ;;  %v653_v37 = vld [vmem:[%s970_s1 + $0xa0] sm:$0xff] (!%p222_p2) }
   0xc   : > { %753 = vmatpush3.bf16.msra.mxu0 (!%p222_p2), %v752_v12  ;;  %v776_v36 = vpack.c.bf16 (!%p222_p2), %v652_v35, %v651_v34  ;;  %v654_v38 = vld [vmem:[%s970_s1 + $0xa8] sm:$0xff] (!%p222_p2)  ;;  %v655_v40 = vld [vmem:[%s970_s1 + $0xb0] sm:$0xff] (!%p222_p2)  ;;  %v656_v41 = vld [vmem:[%s970_s1 + $0xb8] sm:$0xff] (!%p222_p2) }
   0xd   : > { %s977_s22 = smov (!%p254_p3, %s630_s22), 1  ;;  %765 = vmatpush3.bf16.msra.mxu1 %v764_v13  ;;  %754 = vmatprep.subr.bf16.mxu0 %v805_v3  ;;  %v779_v39 = vpack.c.bf16 %v654_v38, %v653_v37  ;;  %v782_v43 = vpack.c.bf16 %v656_v41, %v655_v40  ;;  %v658_v52 = vld [vmem:[%s971_s2] ss:$0 sm:$0xff] }
   0xe   : > { %s663_s25 = sshll.u32 %s977_s22, 4  ;;  %766 = vmatprep.subr.bf16.mxu1 %v805_v3  ;;  %s637_s7 = sshll.u32 %s977_s22, 3  ;;  %v659_v4 = vld [vmem:[%s973_s4] ss:$0 sm:$0xff] }
   0xf   : > { %s258_s28 = scalar_lea.vmem %s969_s0, %s663_s25  ;;  %s262_s10 = scalar_lea.vmem %s972_s3, %s637_s7  ;;  %v660_v6 = vld [vmem:[%s974_s5] ss:$0 sm:$0xff] }
  0x10   : > { %v267_v22 = vld [vmem:[%s258_s28] sm:$0xff]  ;;  %v268_v23 = vld [vmem:[%s258_s28 + $0x8] sm:$0x3]  ;;  %756 = vmatpush3.bf16.msra.mxu0 %v755_v18  ;;  %s266_s18 = scalar_lea.vmem %s975_s6, %s637_s7 }
  0x11   : > { %v289_v27 = vrot.slane %v267_v22, 1  ;;  %v290_v28 = vrot.slane %v268_v23, 1  ;;  %768 = vmatpush3.bf16.msra.mxu1 %v767_v20  ;;  %757 = vmatprep.subr.bf16.mxu0 %v805_v3  ;;  %v448_v42 = vrot.slane %v268_v23, 2  ;;  %v447_v44 = vrot.slane %v267_v22, 2  ;;  %v531_v55 = vld [vmem:[%s262_s10] sm:$0xff] }
  0x12   : > { %769 = vmatprep.subr.bf16.mxu1 %v805_v3 }
  0x13   : > { %v291_v32 = vsel %vm288_vm1, %v289_v27, %v290_v28  ;;  %v449_v45 = vsel %vm446_vm3, %v447_v44, %v448_v42 }
  0x14   : > { %759 = vmatpush3.bf16.msra.mxu0 %v758_v26 }
  0x15   : > { %771 = vmatpush3.bf16.msra.mxu1 %v770_v29  ;;  %772 = vmatprep.subr.bf16.mxu0 %v805_v3 }
  0x17   : > { %708 = vmatmul.mubr.msk.f32.vlgmr.msra.gmra.mrb[0].mxu0 %vm292_vm2, %v291_v32 }
  0x18   : > { %727 = vmatmul.mubr.msk.f32.vlgmr.msra.gmra.mrb[0].mxu1 %vm292_vm2, %v267_v22  ;;  %774 = vmatpush3.bf16.msra.mxu0 %v773_v33 }
  0x19   : > { %775 = vmatprep.subr.bf16.mxu0 %v805_v3  ;;  %745 = vmatprep.mubr.msk.f32.mxu0 %vm806_vm0, %v807_v11 }
  0x1c   : > { %777 = vmatpush3.bf16.msra.mxu0 %v776_v36 }
  0x1d   : > { %778 = vmatprep.subr.bf16.mxu0 %v805_v3 }
  0x20   : > { %780 = vmatpush3.bf16.msra.mxu0 %v779_v39 }
  0x21   : > { %781 = vmatprep.subr.bf16.mxu0 %v805_v3 }
  0x24   : > { %783 = vmatpush3.bf16.msra.mxu0 %v782_v43 }
  0x27   : > { %746 = vmatmul.mubr.msk.f32.vlgmr.msra.gmra.mrb[2].mxu0 %vm292_vm2, %v449_v45 }
  0xea   : > { %v361_v46 = vpop.f32.mrb[0].mxu0 }
  0xeb   : > { %v709_v47 = vpop.f32.mrb[1].mxu0  ;;  %v433_v48 = vpop.f32.mrb[0].mxu1 }
  0xec   : > { %v434_v49 = vadd.f32 %v433_v48, %v361_v46  ;;  %v728_v50 = vpop.f32.mrb[1].mxu1 }
  0xfa   : > { %v518_v51 = vpop.f32.mrb[2].mxu0 }
  0xfb   : > { %v522_v53 = vadd.f32 %v518_v51, %v434_v49  ;;  %v747_v54 = vpop.f32.mrb[3].mxu0 }
  0xfd   : > { %v530_v56 = vadd.f32 %v658_v52, %v522_v53 }
  0xff   : > { %v532_v57 = vadd.f32 %v531_v55, %v530_v56 }
 0x101   : > { %v534_v58 = vsel %vm533_vm4, %v532_v57, 0.0 }
 0x102   : > { %535 = vadd.xlane.f32.xlu0 %v534_v58 }
 0x18f   : > { %v536_v59 = vpop.xlane.xlu0 %535 }
 0x190   : > { %v538_v60 = vmul.f32 0.03125, %v536_v59 }
 0x192   : > { %v539_v61 = vsub.f32 %v532_v57, %v538_v60 }
 0x194   : > { %v540_v62 = vmul.f32 %v539_v61, %v539_v61 }
 0x196   : > { %v541_v63 = vsel %vm533_vm4, %v540_v62, 0.0 }
 0x197   : > { %542 = vadd.xlane.f32.xlu0 %v541_v63 }
 0x224   : > { %v543_v0 = vpop.xlane.xlu0 %542 }
 0x225   : > { %v544_v1 = vmul.f32 0.03125, %v543_v0 }
 0x227   : > { %v545_v2 = vadd.f32 1e-05, %v544_v1 }
 0x229   : > { %795 = vrsqrt.f32 %v545_v2 }
 0x233   : > { %v796_v3 = vpop.eup %795 }
 0x234   : > { %v547_v5 = vmul.f32 %v796_v3, %v539_v61 }
 0x236   : > { %v555_v7 = vmul.f32 %v659_v4, %v547_v5 }
 0x238   : > { %v563_v8 = vadd.f32 %v660_v6, %v555_v7 }
 0x23a   : > { %564 = vst.msk [vmem:[%s266_s18] sm:$0xff] %vm533_vm4, %v563_v8 }
 0x23b PF: > { %s16_s21 = sadd.s32 1, %s803_s21  }
 0x23c   : > { %p13_p4 = scmp.ge.s32.totalorder %s16_s21, 4  }
 0x23e   :  { %15 = sbr.rel (!%p13_p4) target bundleno = 1 (0x1), region = 79 }

// kernel: forward.27
= control target key start
LH: loop header
LB: loop body
LE: loop exit
PB: predicated region body
PF: predicated region fallthrough
CT: control target
= control target key end

     0   :  { %vm29_vm0 = vcmask 261120   ;;  %vm18_vm1 = vcmask 64512   ;;  %v165_v3 = vmov 0.0   ;;  %s221_s1 = inlined_call_operand.vmem [shape: f32[32,8], index: 1, kind: input, shape index: {}]   ;;  %s222_s0 = inlined_call_operand.vmem [shape: f32[16,32], index: 0, kind: input, shape index: {}]   ;;  %s223_s2 = inlined_call_operand.vmem [shape: f32[1,8], index: 2, kind: input, shape index: {}]   ;;  %s224_s3 = inlined_call_operand.vmem [shape: f32[16,8], index: 3, kind: output, shape index: {}]  }
   0x1   :  { %v25_v0 = vld [vmem:[%s221_s1] sm:$0xff]  ;;  %v26_v1 = vld [vmem:[%s221_s1 + $0x8] sm:$0xff]  ;;  %v27_v2 = vld [vmem:[%s221_s1 + $0x10] sm:$0xff]  ;;  %20 = vst.msk [vmem:[#allocation2 + $0x8] sm:$0xff] %vm18_vm1, %v165_v3 }
   0x2   :  { %19 = vst.msk [vmem:[#allocation2] sm:$0xff] %vm18_vm1, %v165_v3  ;;  %v156_v4 = vpack.c.bf16 %v26_v1, %v25_v0  ;;  %v28_v5 = vld [vmem:[%s221_s1 + $0x18] sm:$0xff]  ;;  %v23_v6 = vld [vmem:[%s222_s0] sm:$0xff]  ;;  %v24_v8 = vld [vmem:[%s222_s0 + $0x8] sm:$0xff] }
   0x3   :  { %v160_v7 = vpack.c.bf16 %v28_v5, %v27_v2  ;;  %153 = vmatprep.mubr.msk.f32.mxu0 %vm29_vm0, %v23_v6  ;;  %v138_v15 = vld [vmem:[%s223_s2] ss:$0 sm:$0xff] }
   0x4   :  { %157 = vmatprep.subr.bf16.mxu0 %v156_v4 }
   0x5   :  { %159 = vmatpush3.bf16.msra.mxu0 %v156_v4 }
   0x6   :  { %161 = vmatprep.subr.bf16.mxu0 %v160_v7 }
   0x8   :  { %v22_v9 = vld [vmem:[#allocation2 + $0x8] sm:$0xff] }
   0x9   :  { %163 = vmatpush3.bf16.msra.mxu0 %v160_v7  ;;  %v21_v10 = vld [vmem:[#allocation2] sm:$0xff] }
   0xc   :  { %154 = vmatmul.mubr.msk.f32.vlgmr.msra.gmra.mrb[0].mxu0 %vm29_vm0, %v24_v8 }
  0xdf   :  { %v155_v11 = vpop.f32.mrb[0].mxu0 }
  0xe0   :  { %v112_v12 = vadd.f32 %v155_v11, %v22_v9  ;;  %v102_v13 = vpop.f32.mrb[1].mxu0 }
  0xe1   :  { %v111_v14 = vadd.f32 %v102_v13, %v21_v10 }
  0xe2   :  { %115 = vst.msk [vmem:[#allocation2 + $0x8] sm:$0xff] %vm18_vm1, %v112_v12 }
  0xe3   :  { %114 = vst.msk [vmem:[#allocation2] sm:$0xff] %vm18_vm1, %v111_v14 }
  0xe9   :  { %v120_v16 = vld [vmem:[#allocation2 + $0x8] sm:$0xff] }
  0xea   :  { %v129_v17 = vadd.f32 %v138_v15, %v120_v16  ;;  %v119_v18 = vld [vmem:[#allocation2] sm:$0xff] }
  0xeb   :  { %v128_v19 = vadd.f32 %v138_v15, %v119_v18 }
  0xec   :  { %131 = vst.msk [vmem:[%s224_s3 + $0x8] sm:$0xff] %vm18_vm1, %v129_v17 }
  0xed   :  { %130 = vst.msk [vmem:[%s224_s3] sm:$0xff] %vm18_vm1, %v128_v19 }

</bundles_post_ra>
